<compile_context>
chip_gen: v6e
topology: v6e:2x2x1
jax: 0.10.0
libtpu: 0.0.40
codegen_flags: <defaults>
</compile_context>

<pallas_src>
import math

import jax
import jax.numpy as jnp
from jax.experimental import pallas as pl
from jax.experimental.pallas import tpu as pltpu

BN_EPS = 0.8
LEAKY_SLOPE = 0.2


def _round_up(x, m):
    return (x + m - 1) // m * m


def _leaky_relu(x):
    # max(x, 0.2*x): one mul + one max (slope < 1), no compare/select pair.
    return jnp.maximum(x, LEAKY_SLOPE * x)


def _batchnorm_train(x, gamma, beta):
    # Training-mode BatchNorm1d with eps=0.8 (biased batch variance).
    # Single fused affine pass: y = x*scale + shift,
    #   scale = gamma * rsqrt(var + eps), shift = beta - mean*scale.
    mean = jnp.mean(x, axis=0, keepdims=True)
    mean_sq = jnp.mean(x * x, axis=0, keepdims=True)
    var = mean_sq - mean * mean
    scale = gamma * jax.lax.rsqrt(var + BN_EPS)
    shift = beta - mean * scale
    return x * scale + shift


# --------------------------------------------------------------------------
# Kernel 1: layers 1-4 (needs whole-batch residency for BN statistics).
# --------------------------------------------------------------------------
def _prologue_kernel(
    z_ref,
    w1_ref, b1_ref,
    w2_ref, b2_ref, g2_ref, be2_ref,
    w3_ref, b3_ref, g3_ref, be3_ref,
    w4_ref, b4_ref, g4_ref, be4_ref,
    h_ref,
):
    # block(latent, 128, normalize=False) — bf16 x bf16 -> f32 accumulate.
    h = jnp.dot(z_ref[...], w1_ref[...], preferred_element_type=jnp.float32)
    h = _leaky_relu(h + b1_ref[...])

    # block(128,256), block(256,512), block(512,1024)  (static unroll)
    for w_ref, b_ref, g_ref, be_ref in (
        (w2_ref, b2_ref, g2_ref, be2_ref),
        (w3_ref, b3_ref, g3_ref, be3_ref),
        (w4_ref, b4_ref, g4_ref, be4_ref),
    ):
        h = jnp.dot(h.astype(jnp.bfloat16), w_ref[...],
                    preferred_element_type=jnp.float32) + b_ref[...]
        h = _leaky_relu(_batchnorm_train(h, g_ref[...], be_ref[...]))

    h_ref[...] = h.astype(h_ref.dtype)


# --------------------------------------------------------------------------
# Kernel 2: Linear(1024, out_dim_padded) + Tanh, tiled over out_dim.
# --------------------------------------------------------------------------
def _final_kernel(h_ref, w5_ref, b5_ref, out_ref):
    acc = jnp.dot(h_ref[...], w5_ref[...], preferred_element_type=jnp.float32)
    out_ref[...] = jnp.tanh(acc + b5_ref[...])


def init_params(key, latent_dim, img_shape):
    """PyTorch-style init U(-1/sqrt(fan_in), 1/sqrt(fan_in)).
    Weights stored bf16 (MXU-native operands); biases / BN affine kept f32."""
    out_dim = int(math.prod(img_shape))
    dims = [(latent_dim, 128), (128, 256), (256, 512), (512, 1024), (1024, out_dim)]
    params = {}
    keys = jax.random.split(key, 2 * len(dims))
    for i, (fin, fout) in enumerate(dims):
        bound = 1.0 / float(fin) ** 0.5
        params[f"w{i+1}"] = jax.random.uniform(
            keys[2 * i], (fin, fout), jnp.float32, -bound, bound
        ).astype(jnp.bfloat16)
        params[f"b{i+1}"] = jax.random.uniform(
            keys[2 * i + 1], (1, fout), jnp.float32, -bound, bound)
    for i, fout in zip((2, 3, 4), (256, 512, 1024)):
        params[f"g{i}"] = jnp.ones((1, fout), jnp.float32)
        params[f"be{i}"] = jnp.zeros((1, fout), jnp.float32)
    return params


def _vmem_limit(footprint_bytes):
    # Actual footprint x2 (double-buffer headroom) + 8 MiB scratch, capped 32 MiB.
    return int(min(32 << 20, 2 * footprint_bytes + (8 << 20)))


def generator_forward(z, params, img_shape, *, max_n_tile=1024):
    B, latent_dim = z.shape
    C, H, W = img_shape
    out_dim = C * H * W

    # Lane-dense padding of the w5 / output N dimension.
    tn = min(max_n_tile, _round_up(out_dim, 128))
    out_pad = _round_up(out_dim, tn)
    n_tiles = out_pad // tn

    w5 = params["w5"]
    b5 = params["b5"]
    if out_pad != w5.shape[1]:
        w5 = jnp.pad(w5, ((0, 0), (0, out_pad - w5.shape[1])))
        b5 = jnp.pad(b5, ((0, 0), (0, out_pad - b5.shape[1])))

    vmem = pl.BlockSpec(memory_space=pltpu.MemorySpace.VMEM)

    # ---- kernel 1: layers 1-4 (whole batch, BN batch statistics) ----------
    args1 = (
        z.astype(jnp.bfloat16),
        params["w1"], params["b1"],
        params["w2"], params["b2"], params["g2"], params["be2"],
        params["w3"], params["b3"], params["g3"], params["be3"],
        params["w4"], params["b4"], params["g4"], params["be4"],
    )
    bytes1 = sum(int(a.size) * a.dtype.itemsize for a in args1) + B * 1024 * 2
    flops1 = 2 * B * (latent_dim * 128 + 128 * 256 + 256 * 512 + 512 * 1024)
    h = pl.pallas_call(
        _prologue_kernel,
        out_shape=jax.ShapeDtypeStruct((B, 1024), jnp.bfloat16),
        in_specs=[vmem] * len(args1),
        out_specs=vmem,
        compiler_params=pltpu.CompilerParams(vmem_limit_bytes=_vmem_limit(bytes1)),
        cost_estimate=pl.CostEstimate(
            flops=flops1,
            transcendentals=256 + 512 + 1024,   # rsqrt per BN feature
            bytes_accessed=bytes1),
    )(*args1)

    # ---- kernel 2: Linear(1024, out_dim) + Tanh, tiled over out_dim -------
    tile_bytes = B * 1024 * 2 + 1024 * tn * 2 + tn * 4 + B * tn * 4
    bytes2 = int(h.size) * 2 + int(w5.size) * 2 + int(b5.size) * 4 + B * out_pad * 4
    out_flat = pl.pallas_call(
        _final_kernel,
        out_shape=jax.ShapeDtypeStruct((B, out_pad), jnp.float32),
        grid=(n_tiles,),
        in_specs=[
            pl.BlockSpec((B, 1024), lambda j: (0, 0)),   # resident across tiles
            pl.BlockSpec((1024, tn), lambda j: (0, j)),
            pl.BlockSpec((1, tn), lambda j: (0, j)),
        ],
        out_specs=pl.BlockSpec((B, tn), lambda j: (0, j)),
        compiler_params=pltpu.CompilerParams(
            dimension_semantics=("parallel",),
            vmem_limit_bytes=_vmem_limit(tile_bytes)),
        cost_estimate=pl.CostEstimate(
            flops=2 * B * 1024 * out_pad,
            transcendentals=B * out_pad,        # tanh
            bytes_accessed=bytes2),
    )(h, w5, b5)

    # img = img.view(img.shape[0], *img_shape) -> NCHW
    return out_flat[:, :out_dim].reshape(B, C, H, W)


def generator_reference(z, params, img_shape):
    """Pure-JAX reference with the same bf16-operand / f32-accumulate matmuls."""
    def dot(a, b):
        return jnp.dot(a.astype(jnp.bfloat16), b.astype(jnp.bfloat16),
                       preferred_element_type=jnp.float32)

    h = _leaky_relu(dot(z, params["w1"]) + params["b1"])
    for i in (2, 3, 4):
        h = dot(h, params[f"w{i}"]) + params[f"b{i}"]
        h = _leaky_relu(_batchnorm_train(h, params[f"g{i}"], params[f"be{i}"]))
    h = jnp.tanh(dot(h, params["w5"]) + params["b5"])
    return h.reshape(z.shape[0], *img_shape)


if __name__ == "__main__":
    # Small, module-consistent shapes: latent_dim=32, img_shape=(1, 8, 8), batch=8.
    # NOTE: for real throughput use B >= 128 (v5e) / 256 (v6e/v7x) — the whole
    # batch still fits one VMEM block, so BN batch-stat semantics are preserved.
    LATENT_DIM = 32
    IMG_SHAPE = (1, 8, 8)   # out_dim = 64, padded to 128 lanes inside the kernel
    BATCH = 8

    key = jax.random.PRNGKey(0)
    k_param, k_z = jax.random.split(key)
    params = init_params(k_param, LATENT_DIM, IMG_SHAPE)
    z = jax.random.normal(k_z, (BATCH, LATENT_DIM), jnp.float32)

    img = jax.block_until_ready(generator_forward(z, params, IMG_SHAPE))
    ref = jax.block_until_ready(generator_reference(z, params, IMG_SHAPE))

    assert img.shape == (BATCH, *IMG_SHAPE), img.shape
    # bf16 matmul operands -> loosened tolerance vs. the (identically-cast) reference.
    assert jnp.allclose(img, ref, atol=2e-2, rtol=2e-2), float(
        jnp.max(jnp.abs(img - ref)))

    print("KERNEL_OK")
</pallas_src>

<mosaic_0001>
module attributes {stable_mosaic.version = 11 : i64} {
  func.func @_prologue_kernel(%arg0: memref<8x32xbf16, #tpu.memory_space<vmem>>, %arg1: memref<32x128xbf16, #tpu.memory_space<vmem>>, %arg2: memref<1x128xf32, #tpu.memory_space<vmem>>, %arg3: memref<128x256xbf16, #tpu.memory_space<vmem>>, %arg4: memref<1x256xf32, #tpu.memory_space<vmem>>, %arg5: memref<1x256xf32, #tpu.memory_space<vmem>>, %arg6: memref<1x256xf32, #tpu.memory_space<vmem>>, %arg7: memref<256x512xbf16, #tpu.memory_space<vmem>>, %arg8: memref<1x512xf32, #tpu.memory_space<vmem>>, %arg9: memref<1x512xf32, #tpu.memory_space<vmem>>, %arg10: memref<1x512xf32, #tpu.memory_space<vmem>>, %arg11: memref<512x1024xbf16, #tpu.memory_space<vmem>>, %arg12: memref<1x1024xf32, #tpu.memory_space<vmem>>, %arg13: memref<1x1024xf32, #tpu.memory_space<vmem>>, %arg14: memref<1x1024xf32, #tpu.memory_space<vmem>>, %arg15: memref<8x1024xbf16, #tpu.memory_space<vmem>>) attributes {dimension_semantics = [], scalar_prefetch = 0 : i64, scratch_operands = 0 : i64, tpu.core_type = #tpu.core_type<tc>} {
    %c0 = arith.constant 0 : index
    %c0_0 = arith.constant 0 : index
    %0 = vector.load %arg0[%c0, %c0_0] : memref<8x32xbf16, #tpu.memory_space<vmem>>, vector<8x32xbf16>
    %c0_1 = arith.constant 0 : index
    %c0_2 = arith.constant 0 : index
    %1 = vector.load %arg1[%c0_1, %c0_2] : memref<32x128xbf16, #tpu.memory_space<vmem>>, vector<32x128xbf16>
    %cst = arith.constant dense<0.000000e+00> : vector<8x128xf32>
    %2 = tpu.matmul %0, %1, %cst {dimension_numbers = #tpu.dot_dimension_numbers<[1], [0], [0], [1], [0, 0, 1, 1], [], []>} : vector<8x32xbf16>, vector<32x128xbf16>, vector<8x128xf32> -> vector<8x128xf32>
    %c0_3 = arith.constant 0 : index
    %c0_4 = arith.constant 0 : index
    %3 = vector.load %arg2[%c0_3, %c0_4] : memref<1x128xf32, #tpu.memory_space<vmem>>, vector<1x128xf32>
    %4 = vector.broadcast %3 : vector<1x128xf32> to vector<8x128xf32>
    %5 = arith.addf %2, %4 : vector<8x128xf32>
    %cst_5 = arith.constant 2.000000e-01 : f32
    %6 = vector.broadcast %cst_5 : f32 to vector<8x128xf32>
    %7 = arith.mulf %6, %5 : vector<8x128xf32>
    %8 = arith.maximumf %5, %7 : vector<8x128xf32>
    %9 = arith.truncf %8 : vector<8x128xf32> to vector<8x128xbf16>
    %c0_6 = arith.constant 0 : index
    %c0_7 = arith.constant 0 : index
    %10 = vector.load %arg3[%c0_6, %c0_7] : memref<128x256xbf16, #tpu.memory_space<vmem>>, vector<128x256xbf16>
    %cst_8 = arith.constant dense<0.000000e+00> : vector<8x256xf32>
    %11 = tpu.matmul %9, %10, %cst_8 {dimension_numbers = #tpu.dot_dimension_numbers<[1], [0], [0], [1], [0, 0, 1, 1], [], []>} : vector<8x128xbf16>, vector<128x256xbf16>, vector<8x256xf32> -> vector<8x256xf32>
    %c0_9 = arith.constant 0 : index
    %c0_10 = arith.constant 0 : index
    %12 = vector.load %arg4[%c0_9, %c0_10] : memref<1x256xf32, #tpu.memory_space<vmem>>, vector<1x256xf32>
    %13 = vector.broadcast %12 : vector<1x256xf32> to vector<8x256xf32>
    %14 = arith.addf %11, %13 : vector<8x256xf32>
    %c0_11 = arith.constant 0 : index
    %c0_12 = arith.constant 0 : index
    %15 = vector.load %arg5[%c0_11, %c0_12] : memref<1x256xf32, #tpu.memory_space<vmem>>, vector<1x256xf32>
    %c0_13 = arith.constant 0 : index
    %c0_14 = arith.constant 0 : index
    %16 = vector.load %arg6[%c0_13, %c0_14] : memref<1x256xf32, #tpu.memory_space<vmem>>, vector<1x256xf32>
    %cst_15 = arith.constant dense<0.000000e+00> : vector<256xf32>
    %17 = vector.multi_reduction <add>, %14, %cst_15 [0] : vector<8x256xf32> to vector<256xf32>
    %18 = vector.shape_cast %17 : vector<256xf32> to vector<1x256xf32>
    %cst_16 = arith.constant 8.000000e+00 : f32
    %19 = vector.broadcast %cst_16 : f32 to vector<1x256xf32>
    %20 = arith.divf %18, %19 : vector<1x256xf32>
    %21 = arith.mulf %14, %14 : vector<8x256xf32>
    %cst_17 = arith.constant dense<0.000000e+00> : vector<256xf32>
    %22 = vector.multi_reduction <add>, %21, %cst_17 [0] : vector<8x256xf32> to vector<256xf32>
    %23 = vector.shape_cast %22 : vector<256xf32> to vector<1x256xf32>
    %cst_18 = arith.constant 8.000000e+00 : f32
    %24 = vector.broadcast %cst_18 : f32 to vector<1x256xf32>
    %25 = arith.divf %23, %24 : vector<1x256xf32>
    %26 = arith.mulf %20, %20 : vector<1x256xf32>
    %27 = arith.subf %25, %26 : vector<1x256xf32>
    %cst_19 = arith.constant 8.000000e-01 : f32
    %28 = vector.broadcast %cst_19 : f32 to vector<1x256xf32>
    %29 = arith.addf %27, %28 : vector<1x256xf32>
    %30 = math.rsqrt %29 : vector<1x256xf32>
    %31 = arith.mulf %15, %30 : vector<1x256xf32>
    %32 = arith.mulf %20, %31 : vector<1x256xf32>
    %33 = arith.subf %16, %32 : vector<1x256xf32>
    %34 = vector.broadcast %31 : vector<1x256xf32> to vector<8x256xf32>
    %35 = arith.mulf %14, %34 : vector<8x256xf32>
    %36 = vector.broadcast %33 : vector<1x256xf32> to vector<8x256xf32>
    %37 = arith.addf %35, %36 : vector<8x256xf32>
    %cst_20 = arith.constant 2.000000e-01 : f32
    %38 = vector.broadcast %cst_20 : f32 to vector<8x256xf32>
    %39 = arith.mulf %38, %37 : vector<8x256xf32>
    %40 = arith.maximumf %37, %39 : vector<8x256xf32>
    %41 = arith.truncf %40 : vector<8x256xf32> to vector<8x256xbf16>
    %c0_21 = arith.constant 0 : index
    %c0_22 = arith.constant 0 : index
    %42 = vector.load %arg7[%c0_21, %c0_22] : memref<256x512xbf16, #tpu.memory_space<vmem>>, vector<256x512xbf16>
    %cst_23 = arith.constant dense<0.000000e+00> : vector<8x512xf32>
    %43 = tpu.matmul %41, %42, %cst_23 {dimension_numbers = #tpu.dot_dimension_numbers<[1], [0], [0], [1], [0, 0, 1, 1], [], []>} : vector<8x256xbf16>, vector<256x512xbf16>, vector<8x512xf32> -> vector<8x512xf32>
    %c0_24 = arith.constant 0 : index
    %c0_25 = arith.constant 0 : index
    %44 = vector.load %arg8[%c0_24, %c0_25] : memref<1x512xf32, #tpu.memory_space<vmem>>, vector<1x512xf32>
    %45 = vector.broadcast %44 : vector<1x512xf32> to vector<8x512xf32>
    %46 = arith.addf %43, %45 : vector<8x512xf32>
    %c0_26 = arith.constant 0 : index
    %c0_27 = arith.constant 0 : index
    %47 = vector.load %arg9[%c0_26, %c0_27] : memref<1x512xf32, #tpu.memory_space<vmem>>, vector<1x512xf32>
    %c0_28 = arith.constant 0 : index
    %c0_29 = arith.constant 0 : index
    %48 = vector.load %arg10[%c0_28, %c0_29] : memref<1x512xf32, #tpu.memory_space<vmem>>, vector<1x512xf32>
    %cst_30 = arith.constant dense<0.000000e+00> : vector<512xf32>
    %49 = vector.multi_reduction <add>, %46, %cst_30 [0] : vector<8x512xf32> to vector<512xf32>
    %50 = vector.shape_cast %49 : vector<512xf32> to vector<1x512xf32>
    %cst_31 = arith.constant 8.000000e+00 : f32
    %51 = vector.broadcast %cst_31 : f32 to vector<1x512xf32>
    %52 = arith.divf %50, %51 : vector<1x512xf32>
    %53 = arith.mulf %46, %46 : vector<8x512xf32>
    %cst_32 = arith.constant dense<0.000000e+00> : vector<512xf32>
    %54 = vector.multi_reduction <add>, %53, %cst_32 [0] : vector<8x512xf32> to vector<512xf32>
    %55 = vector.shape_cast %54 : vector<512xf32> to vector<1x512xf32>
    %cst_33 = arith.constant 8.000000e+00 : f32
    %56 = vector.broadcast %cst_33 : f32 to vector<1x512xf32>
    %57 = arith.divf %55, %56 : vector<1x512xf32>
    %58 = arith.mulf %52, %52 : vector<1x512xf32>
    %59 = arith.subf %57, %58 : vector<1x512xf32>
    %cst_34 = arith.constant 8.000000e-01 : f32
    %60 = vector.broadcast %cst_34 : f32 to vector<1x512xf32>
    %61 = arith.addf %59, %60 : vector<1x512xf32>
    %62 = math.rsqrt %61 : vector<1x512xf32>
    %63 = arith.mulf %47, %62 : vector<1x512xf32>
    %64 = arith.mulf %52, %63 : vector<1x512xf32>
    %65 = arith.subf %48, %64 : vector<1x512xf32>
    %66 = vector.broadcast %63 : vector<1x512xf32> to vector<8x512xf32>
    %67 = arith.mulf %46, %66 : vector<8x512xf32>
    %68 = vector.broadcast %65 : vector<1x512xf32> to vector<8x512xf32>
    %69 = arith.addf %67, %68 : vector<8x512xf32>
    %cst_35 = arith.constant 2.000000e-01 : f32
    %70 = vector.broadcast %cst_35 : f32 to vector<8x512xf32>
    %71 = arith.mulf %70, %69 : vector<8x512xf32>
    %72 = arith.maximumf %69, %71 : vector<8x512xf32>
    %73 = arith.truncf %72 : vector<8x512xf32> to vector<8x512xbf16>
    %c0_36 = arith.constant 0 : index
    %c0_37 = arith.constant 0 : index
    %74 = vector.load %arg11[%c0_36, %c0_37] : memref<512x1024xbf16, #tpu.memory_space<vmem>>, vector<512x1024xbf16>
    %cst_38 = arith.constant dense<0.000000e+00> : vector<8x1024xf32>
    %75 = tpu.matmul %73, %74, %cst_38 {dimension_numbers = #tpu.dot_dimension_numbers<[1], [0], [0], [1], [0, 0, 1, 1], [], []>} : vector<8x512xbf16>, vector<512x1024xbf16>, vector<8x1024xf32> -> vector<8x1024xf32>
    %c0_39 = arith.constant 0 : index
    %c0_40 = arith.constant 0 : index
    %76 = vector.load %arg12[%c0_39, %c0_40] : memref<1x1024xf32, #tpu.memory_space<vmem>>, vector<1x1024xf32>
    %77 = vector.broadcast %76 : vector<1x1024xf32> to vector<8x1024xf32>
    %78 = arith.addf %75, %77 : vector<8x1024xf32>
    %c0_41 = arith.constant 0 : index
    %c0_42 = arith.constant 0 : index
    %79 = vector.load %arg13[%c0_41, %c0_42] : memref<1x1024xf32, #tpu.memory_space<vmem>>, vector<1x1024xf32>
    %c0_43 = arith.constant 0 : index
    %c0_44 = arith.constant 0 : index
    %80 = vector.load %arg14[%c0_43, %c0_44] : memref<1x1024xf32, #tpu.memory_space<vmem>>, vector<1x1024xf32>
    %cst_45 = arith.constant dense<0.000000e+00> : vector<1024xf32>
    %81 = vector.multi_reduction <add>, %78, %cst_45 [0] : vector<8x1024xf32> to vector<1024xf32>
    %82 = vector.shape_cast %81 : vector<1024xf32> to vector<1x1024xf32>
    %cst_46 = arith.constant 8.000000e+00 : f32
    %83 = vector.broadcast %cst_46 : f32 to vector<1x1024xf32>
    %84 = arith.divf %82, %83 : vector<1x1024xf32>
    %85 = arith.mulf %78, %78 : vector<8x1024xf32>
    %cst_47 = arith.constant dense<0.000000e+00> : vector<1024xf32>
    %86 = vector.multi_reduction <add>, %85, %cst_47 [0] : vector<8x1024xf32> to vector<1024xf32>
    %87 = vector.shape_cast %86 : vector<1024xf32> to vector<1x1024xf32>
    %cst_48 = arith.constant 8.000000e+00 : f32
    %88 = vector.broadcast %cst_48 : f32 to vector<1x1024xf32>
    %89 = arith.divf %87, %88 : vector<1x1024xf32>
    %90 = arith.mulf %84, %84 : vector<1x1024xf32>
    %91 = arith.subf %89, %90 : vector<1x1024xf32>
    %cst_49 = arith.constant 8.000000e-01 : f32
    %92 = vector.broadcast %cst_49 : f32 to vector<1x1024xf32>
    %93 = arith.addf %91, %92 : vector<1x1024xf32>
    %94 = math.rsqrt %93 : vector<1x1024xf32>
    %95 = arith.mulf %79, %94 : vector<1x1024xf32>
    %96 = arith.mulf %84, %95 : vector<1x1024xf32>
    %97 = arith.subf %80, %96 : vector<1x1024xf32>
    %98 = vector.broadcast %95 : vector<1x1024xf32> to vector<8x1024xf32>
    %99 = arith.mulf %78, %98 : vector<8x1024xf32>
    %100 = vector.broadcast %97 : vector<1x1024xf32> to vector<8x1024xf32>
    %101 = arith.addf %99, %100 : vector<8x1024xf32>
    %cst_50 = arith.constant 2.000000e-01 : f32
    %102 = vector.broadcast %cst_50 : f32 to vector<8x1024xf32>
    %103 = arith.mulf %102, %101 : vector<8x1024xf32>
    %104 = arith.maximumf %101, %103 : vector<8x1024xf32>
    %105 = arith.truncf %104 : vector<8x1024xf32> to vector<8x1024xbf16>
    %c0_51 = arith.constant 0 : index
    %c0_52 = arith.constant 0 : index
    %106 = vector.load %arg15[%c0_51, %c0_52] : memref<8x1024xbf16, #tpu.memory_space<vmem>>, vector<8x1024xbf16>
    tpu.vector_store %arg15[%c0_51, %c0_52], %105 {strides = array<i32>} : memref<8x1024xbf16, #tpu.memory_space<vmem>>, vector<8x1024xbf16>,
    return
  }
}

</mosaic_0001>

<bundles_post_ra>
// kernel: tpu_custom_call.1
= control target key start
LH: loop header
LB: loop body
LE: loop exit
PB: predicated region body
PF: predicated region fallthrough
CT: control target
= control target key end

     0   :  { %20 = vsyncpa [#allocation3], 0  ;;  %s4823_s0 = inlined_call_operand.hbm [shape: bf16[8,32], index: 0, kind: input, shape index: {}]   ;;  %s4824_s1 = inlined_call_operand.hbm [shape: bf16[32,128], index: 1, kind: input, shape index: {}]   ;;  %s4825_s2 = inlined_call_operand.hbm [shape: f32[1,128], index: 2, kind: input, shape index: {}]   ;;  %s4826_s3 = inlined_call_operand.hbm [shape: bf16[128,256], index: 3, kind: input, shape index: {}]   ;;  %s4827_s4 = inlined_call_operand.hbm [shape: f32[1,256], index: 4, kind: input, shape index: {}]   ;;  %s4828_s5 = inlined_call_operand.hbm [shape: f32[1,256], index: 5, kind: input, shape index: {}]   ;;  %s4829_s6 = inlined_call_operand.hbm [shape: f32[1,256], index: 6, kind: input, shape index: {}]   ;;  %s4830_s7 = inlined_call_operand.hbm [shape: bf16[256,512], index: 7, kind: input, shape index: {}]   ;;  %s4831_s8 = inlined_call_operand.hbm [shape: f32[1,512], index: 8, kind: input, shape index: {}]   ;;  %s4832_s9 = inlined_call_operand.hbm [shape: f32[1,512], index: 9, kind: input, shape index: {}]   ;;  %s4833_s10 = inlined_call_operand.hbm [shape: f32[1,512], index: 10, kind: input, shape index: {}]   ;;  %s4834_s11 = inlined_call_operand.hbm [shape: bf16[512,1024], index: 11, kind: input, shape index: {}]   ;;  %s4835_s12 = inlined_call_operand.vmem [shape: f32[1,1024], index: 12, kind: input, shape index: {}]   ;;  %s4836_s13 = inlined_call_operand.vmem [shape: f32[1,1024], index: 13, kind: input, shape index: {}]   ;;  %s4837_s14 = inlined_call_operand.vmem [shape: f32[1,1024], index: 14, kind: input, shape index: {}]   ;;  %s4838_s15 = inlined_call_operand.hbm [shape: bf16[8,1024], index: 15, kind: output, shape index: {}]  }
   0x1   :  { %21 = vsyncpa [#allocation6], 0 }
   0x2   :  { %22 = vsyncpa [#allocation9], 0 }
   0x3   :  { %23 = vsyncpa [#allocation12], 0 }
   0x4   :  { %24 = vsyncpa [#allocation15], 0 }
   0x5   :  { %25 = vsyncpa [#allocation18], 0 }
   0x6   :  { %26 = vsyncpa [#allocation21], 0 }
   0x7   :  { %27 = vsyncpa [#allocation4], 0  ;;  %s4391_s18 = smov [#allocation5]  }
   0x8   :  { %s43_s19 = sshll.u32 %s4391_s18, 4  ;;  %s44_s19 = int_to_ptr.vmem [resolvable:$true] %s43_s19 }
   0x9   :  { %s4123_s20 = scalar_lea.vmem %s44_s19, 256  ;;  %p4128_p1 = scmp.lt.s32.totalorder %s44_s19, %s44_s19 }
   0xa   :  { %p4124_p0 = scmp.ne.s32.totalorder %s44_s19, %s4123_s20  ;;  %p4129_p2 = scmp.lt.s32.totalorder %s4123_s20, %s4123_s20 }
   0xc   :  { %p4130_p3 = por %p4129_p2, %p4128_p1 }
   0xe   :  { %p4131_p4 = pnand %p4130_p3, %p4124_p0 }
  0x10   :  { %4134 = shalt.err (!%p4131_p4)
}
  0x11   :  { %s4392_s21 = smov 64   ;;  %s4393_s22 = smov 4  }
  0x12   :  { %49 = dma.hbm_to_vmem [thread:$0]  %s4824_s1, 256, %s44_s19, [#allocation6], %s4392_s21, %s4392_s21, %s4393_s22  }
  0x13   :  { %s4394_s25 = smov [#allocation8]  }
  0x14   :  { %s65_s26 = sshll.u32 %s4394_s25, 4  ;;  %s66_s26 = int_to_ptr.vmem [resolvable:$true] %s65_s26 }
  0x15   :  { %s4143_s27 = scalar_lea.vmem %s66_s26, 2048  ;;  %p4148_p6 = scmp.lt.s32.totalorder %s66_s26, %s66_s26 }
  0x16   :  { %p4144_p5 = scmp.ne.s32.totalorder %s66_s26, %s4143_s27  ;;  %p4149_p7 = scmp.lt.s32.totalorder %s4143_s27, %s4143_s27 }
  0x18   :  { %p4150_p8 = por %p4149_p7, %p4148_p6 }
  0x1a   :  { %p4151_p9 = pnand %p4150_p8, %p4144_p5 }
  0x1c   :  { %4154 = shalt.err (!%p4151_p9)
}
  0x1d   :  { %s4395_s28 = smov 128   ;;  %s4396_s29 = smov 8  }
  0x1e   :  { %71 = dma.hbm_to_vmem [thread:$0]  %s4826_s3, 2048, %s66_s26, [#allocation9], %s4395_s28, %s4395_s28, %s4396_s29  }
  0x1f   :  { %s4397_s17 = smov [#allocation11]   ;;  %s4398_s20 = smov [#allocation14]  }
  0x20   :  { %s88_s18 = sshll.u32 %s4397_s17, 4  ;;  %s107_s1 = sshll.u32 %s4398_s20, 4  ;;  %s89_s18 = int_to_ptr.vmem [resolvable:$true] %s88_s18  ;;  %s108_s1 = int_to_ptr.vmem [resolvable:$true] %s107_s1 }
  0x21   :  { %s4163_s19 = scalar_lea.vmem %s89_s18, 32  ;;  %p4168_p11 = scmp.lt.s32.totalorder %s89_s18, %s89_s18 }
  0x22   :  { %p4164_p10 = scmp.ne.s32.totalorder %s89_s18, %s4163_s19  ;;  %p4169_p12 = scmp.lt.s32.totalorder %s4163_s19, %s4163_s19 }
  0x24   :  { %p4170_p13 = por %p4169_p12, %p4168_p11 }
  0x26   :  { %p4171_p0 = pnand %p4170_p13, %p4164_p10 }
  0x28   :  { %4174 = shalt.err (!%p4171_p0)
}
  0x29   :  { %91 = dma.hbm_to_vmem [thread:$0]  %s4828_s5, 32, %s89_s18, [#allocation12]  }
  0x2a   :  { %s4183_s23 = scalar_lea.vmem %s108_s1, 8192  ;;  %p4188_p2 = scmp.lt.s32.totalorder %s108_s1, %s108_s1 }
  0x2b   :  { %p4184_p1 = scmp.ne.s32.totalorder %s108_s1, %s4183_s23  ;;  %p4189_p3 = scmp.lt.s32.totalorder %s4183_s23, %s4183_s23 }
  0x2d   :  { %p4190_p4 = por %p4189_p3, %p4188_p2 }
  0x2f   :  { %p4191_p5 = pnand %p4190_p4, %p4184_p1 }
  0x31   :  { %4194 = shalt.err (!%p4191_p5)
}
  0x32   :  { %s4399_s3 = smov 256   ;;  %s4400_s24 = smov 16  }
  0x33   :  { %113 = dma.hbm_to_vmem [thread:$0]  %s4830_s7, 8192, %s108_s1, [#allocation15], %s4399_s3, %s4399_s3, %s4400_s24  }
  0x34   :  { %s4401_s27 = smov [#allocation17]   ;;  %s4402_s29 = smov [#allocation2]  }
  0x35   :  { %s130_s28 = sshll.u32 %s4401_s27, 4  ;;  %s34_s30 = sshll.u32 %s4402_s29, 4  ;;  %s131_s28 = int_to_ptr.vmem [resolvable:$true] %s130_s28  ;;  %s35_s30 = int_to_ptr.vmem [resolvable:$true] %s34_s30 }
  0x36   :  { %s4203_s5 = scalar_lea.vmem %s131_s28, 64  ;;  %p4208_p7 = scmp.lt.s32.totalorder %s131_s28, %s131_s28 }
  0x37   :  { %p4204_p6 = scmp.ne.s32.totalorder %s131_s28, %s4203_s5  ;;  %p4209_p8 = scmp.lt.s32.totalorder %s4203_s5, %s4203_s5 }
  0x39   :  { %p4210_p9 = por %p4209_p8, %p4208_p7 }
  0x3b   :  { %p4211_p10 = pnand %p4210_p9, %p4204_p6 }
  0x3d   :  { %4214 = shalt.err (!%p4211_p10)
}
  0x3e   :  { %133 = dma.hbm_to_vmem [thread:$0]  %s4832_s9, 64, %s131_s28, [#allocation18]  }
  0x3f   :  { %s4223_s18 = scalar_lea.vmem %s35_s30, 64  ;;  %p4228_p12 = scmp.lt.s32.totalorder %s35_s30, %s35_s30 }
  0x40   :  { %p4224_p11 = scmp.ne.s32.totalorder %s35_s30, %s4223_s18  ;;  %p4229_p13 = scmp.lt.s32.totalorder %s4223_s18, %s4223_s18 }
  0x42   :  { %p4230_p0 = por %p4229_p13, %p4228_p12 }
  0x44   :  { %p4231_p1 = pnand %p4230_p0, %p4224_p11 }
  0x46   :  { %4234 = shalt.err (!%p4231_p1)
}
  0x47   :  { %37 = dma.hbm_to_vmem [thread:$0]  %s4823_s0, 64, %s35_s30, [#allocation3]  }
  0x48   :  { %s4403_s1 = smov [#allocation7]   ;;  %s4404_s21 = smov [#allocation10]  }
  0x49   :  { %s56_s19 = sshll.u32 %s4403_s1, 4  ;;  %s78_s22 = sshll.u32 %s4404_s21, 4  ;;  %s57_s19 = int_to_ptr.vmem [resolvable:$true] %s56_s19  ;;  %s79_s22 = int_to_ptr.vmem [resolvable:$true] %s78_s22 }
  0x4a   :  { %s4243_s23 = scalar_lea.vmem %s57_s19, 16  ;;  %s4247_s9 = scalar_lea.vmem %s57_s19, 32 }
  0x4b   :  { %p4244_p2 = scmp.ne.s32.totalorder %s57_s19, %s4243_s23  ;;  %p4248_p3 = scmp.lt.s32.totalorder %s57_s19, %s57_s19 }
  0x4c   :  { %p4249_p4 = scmp.lt.s32.totalorder %s4247_s9, %s4243_s23 }
  0x4e   :  { %p4250_p5 = por %p4249_p4, %p4248_p3 }
  0x50   :  { %p4251_p6 = pnand %p4250_p5, %p4244_p2 }
  0x52   :  { %4254 = shalt.err (!%p4251_p6)
}
  0x53   :  { %59 = dma.hbm_to_vmem [thread:$0]  %s4825_s2, 16, %s57_s19, [#allocation6]  }
  0x54   :  { %s4263_s25 = scalar_lea.vmem %s79_s22, 32  ;;  %p4268_p8 = scmp.lt.s32.totalorder %s79_s22, %s79_s22 }
  0x55   :  { %p4264_p7 = scmp.ne.s32.totalorder %s79_s22, %s4263_s25  ;;  %p4269_p9 = scmp.lt.s32.totalorder %s4263_s25, %s4263_s25 }
  0x57   :  { %p4270_p10 = por %p4269_p9, %p4268_p8 }
  0x59   :  { %p4271_p11 = pnand %p4270_p10, %p4264_p7 }
  0x5b   :  { %4274 = shalt.err (!%p4271_p11)
}
  0x5c   :  { %81 = dma.hbm_to_vmem [thread:$0]  %s4827_s4, 32, %s79_s22, [#allocation9]  }
  0x5d   :  { %s4405_s27 = smov [#allocation13]   ;;  %s4406_s29 = smov [#allocation16]  }
  0x5e   :  { %s98_s28 = sshll.u32 %s4405_s27, 4  ;;  %s120_s30 = sshll.u32 %s4406_s29, 4  ;;  %s99_s28 = int_to_ptr.vmem [resolvable:$true] %s98_s28  ;;  %s121_s30 = int_to_ptr.vmem [resolvable:$true] %s120_s30 }
  0x5f   :  { %s4283_s5 = scalar_lea.vmem %s99_s28, 32  ;;  %p4288_p13 = scmp.lt.s32.totalorder %s99_s28, %s99_s28 }
  0x60   :  { %p4284_p12 = scmp.ne.s32.totalorder %s99_s28, %s4283_s5  ;;  %p4289_p0 = scmp.lt.s32.totalorder %s4283_s5, %s4283_s5 }
  0x62   :  { %p4290_p1 = por %p4289_p0, %p4288_p13 }
  0x64   :  { %p4291_p2 = pnand %p4290_p1, %p4284_p12 }
  0x66   :  { %4294 = shalt.err (!%p4291_p2)
}
  0x67   :  { %101 = dma.hbm_to_vmem [thread:$0]  %s4829_s6, 32, %s99_s28, [#allocation12]  }
  0x68   :  { %s4303_s17 = scalar_lea.vmem %s121_s30, 64  ;;  %p4308_p4 = scmp.lt.s32.totalorder %s121_s30, %s121_s30 }
  0x69   :  { %p4304_p3 = scmp.ne.s32.totalorder %s121_s30, %s4303_s17  ;;  %p4309_p5 = scmp.lt.s32.totalorder %s4303_s17, %s4303_s17 }
  0x6b   :  { %p4310_p6 = por %p4309_p5, %p4308_p4 }
  0x6d   :  { %p4311_p7 = pnand %p4310_p6, %p4304_p3 }
  0x6f   :  { %4314 = shalt.err (!%p4311_p7)
}
  0x70   :  { %123 = dma.hbm_to_vmem [thread:$0]  %s4831_s8, 64, %s121_s30, [#allocation15]  }
  0x71   :  { %s4407_s7 = smov [#allocation19]   ;;  %s4408_s1 = smov [#allocation20]  }
  0x72   :  { %s140_s20 = sshll.u32 %s4407_s7, 4  ;;  %s149_s19 = sshll.u32 %s4408_s1, 4  ;;  %s141_s20 = int_to_ptr.vmem [resolvable:$true] %s140_s20  ;;  %s150_s19 = int_to_ptr.vmem [resolvable:$true] %s149_s19 }
  0x73   :  { %s4323_s21 = scalar_lea.vmem %s141_s20, 64  ;;  %p4328_p9 = scmp.lt.s32.totalorder %s141_s20, %s141_s20 }
  0x74   :  { %p4324_p8 = scmp.ne.s32.totalorder %s141_s20, %s4323_s21  ;;  %p4329_p10 = scmp.lt.s32.totalorder %s4323_s21, %s4323_s21 }
  0x76   :  { %p4330_p11 = por %p4329_p10, %p4328_p9 }
  0x78   :  { %p4331_p12 = pnand %p4330_p11, %p4324_p8 }
  0x7a   :  { %4334 = shalt.err (!%p4331_p12)
}
  0x7b   :  { %143 = dma.hbm_to_vmem [thread:$0]  %s4833_s10, 64, %s141_s20, [#allocation18]  }
  0x7c   :  { %s4343_s23 = scalar_lea.vmem %s150_s19, 32768  ;;  %p4348_p0 = scmp.lt.s32.totalorder %s150_s19, %s150_s19 }
  0x7d   :  { %p4344_p13 = scmp.ne.s32.totalorder %s150_s19, %s4343_s23  ;;  %p4349_p1 = scmp.lt.s32.totalorder %s4343_s23, %s4343_s23 }
  0x7f   :  { %p4350_p2 = por %p4349_p1, %p4348_p0 }
  0x81   :  { %p4351_p3 = pnand %p4350_p2, %p4344_p13 }
  0x83   :  { %4354 = shalt.err (!%p4351_p3)
}
  0x84   :  { %s4409_s8 = smov 512   ;;  %s4410_s9 = smov 32  }
  0x85   :  { %155 = dma.hbm_to_vmem [thread:$0]  %s4834_s11, 32768, %s150_s19, [#allocation21], %s4409_s8, %s4409_s8, %s4410_s9  }
  0x86   :  { %4375 = dma.done.wait [#allocation3], 64  }
  0x87   :  { %4376 = vsyncadd [#allocation3], 4294967232 }
  0x88   :  { %4377 = dma.done.wait [#allocation6], 272  }
  0x89   :  { %4378 = vsyncadd [#allocation6], 4294967024 }
  0x8a   :  { %4379 = dma.done.wait [#allocation9], 2080  }
  0x8b   :  { %4380 = vsyncadd [#allocation9], 4294965216 }
  0x8c   :  { %4381 = dma.done.wait [#allocation12], 64  }
  0x8d   :  { %4382 = vsyncadd [#allocation12], 4294967232 }
  0x8e   :  { %4383 = dma.done.wait [#allocation15], 8256  }
  0x8f   :  { %4384 = vsyncadd [#allocation15], 4294959040 }
  0x90   :  { %4385 = dma.done.wait [#allocation18], 128  }
  0x91   :  { %4386 = vsyncadd [#allocation18], 4294967168 }
  0x92   :  { %4387 = dma.done.wait [#allocation21], 32768  }
  0x93   :  { %4388 = vsyncadd [#allocation21], 4294934528  ;;  %v4411_v0 = vmov 0.0   ;;  %vm4412_vm0 = vmmov 0   ;;  %v3965_v1 = vld [vmem:[#allocation5 + $0x8] sm:$0xff]   ;;  %v3966_v2 = vld [vmem:[#allocation5] sm:$0xff]  }
  0x94   :  { %3932 = vmatprep.subr.bf16.mxu0 %v4411_v0  ;;  %3936 = vmatprep.mubr.msk.bf16.mxu0 %vm4412_vm0, %v4411_v0  ;;  %v3967_v3 = vld [vmem:[#allocation8 + $0x74] ss:$8 sps:$4 sm:$0xff]   ;;  %v3969_v4 = vld [vmem:[#allocation8 + $0x70] ss:$8 sps:$4 sm:$0xff]   ;;  %v3970_v5 = vld [vmem:[#allocation8 + $0x64] ss:$8 sps:$4 sm:$0xff]  }
  0x95   :  { %3933 = vmatpush3.bf16.msra.mxu0 %v3965_v1  ;;  %v199_v6 = vld [vmem:[#allocation2] sm:$0xf]  ;;  %378 = vmatprep.subr.bf16.mxu1 %v3967_v3  ;;  %vm223_vm1 = vcmask 261120   ;;  %v3973_v8 = vld [vmem:[#allocation8 + $0x54] ss:$8 sps:$4 sm:$0xff]   ;;  %v4413_v20 = vmov 0  }
  0x96   :  { %3934 = vmatprep.subr.bf16.mxu0 %v4411_v0  ;;  %379 = vmatpush1.bf16.msra.mxu1 %v3969_v4  ;;  %v3972_v7 = vld [vmem:[#allocation8 + $0x60] ss:$8 sps:$4 sm:$0xff]   ;;  %v3975_v9 = vld [vmem:[#allocation8 + $0x50] ss:$8 sps:$4 sm:$0xff]   ;;  %v3976_v10 = vld [vmem:[#allocation8 + $0x44] ss:$8 sps:$4 sm:$0xff]  }
  0x97   :  { %380 = vmatprep.subr.bf16.mxu1 %v3970_v5  ;;  %v3978_v11 = vld [vmem:[#allocation8 + $0x40] ss:$8 sps:$4 sm:$0xff]   ;;  %v3979_v12 = vld [vmem:[#allocation8 + $0x34] ss:$8 sps:$4 sm:$0xff]   ;;  %v3981_v13 = vld [vmem:[#allocation8 + $0x30] ss:$8 sps:$4 sm:$0xff]   ;;  %410 = vmatprep.mubr.bf16.mxu1 %v4413_v20 }
  0x98   :  { %v3982_v14 = vld [vmem:[#allocation8 + $0x24] ss:$8 sps:$4 sm:$0xff]   ;;  %v3984_v15 = vld [vmem:[#allocation8 + $0x20] ss:$8 sps:$4 sm:$0xff]   ;;  %v3985_v16 = vld [vmem:[#allocation8 + $0x14] ss:$8 sps:$4 sm:$0xff]  }
  0x99   :  { %3935 = vmatpush3.bf16.msra.mxu0 %v3966_v2  ;;  %v3987_v17 = vld [vmem:[#allocation8 + $0x10] ss:$8 sps:$4 sm:$0xff]   ;;  %v3988_v18 = vld [vmem:[#allocation8 + $0x4] ss:$8 sps:$4 sm:$0xff]   ;;  %v3990_v19 = vld [vmem:[#allocation8] ss:$8 sps:$4 sm:$0xff]  }
  0x9a   :  { %381 = vmatpush1.bf16.msra.mxu1 %v3972_v7  ;;  %v3581_v21 = vld [vmem:[#allocation7] ss:$0 sm:$0xff]  ;;  %v3993_v30 = vld [vmem:[#allocation14 + $0xe4] ss:$16 sps:$4 sm:$0xff]   ;;  %v3996_v31 = vld [vmem:[#allocation14 + $0xec] ss:$16 sps:$4 sm:$0xff]  }
  0x9b   :  { %382 = vmatprep.subr.bf16.mxu1 %v3973_v8  ;;  %v3991_v32 = vld [vmem:[#allocation14 + $0xe0] ss:$16 sps:$4 sm:$0xff]   ;;  %v3994_v33 = vld [vmem:[#allocation14 + $0xe8] ss:$16 sps:$4 sm:$0xff]   ;;  %938 = vmatprep.subr.bf16.mxu0 %v3993_v30  ;;  %v3999_v34 = vld [vmem:[#allocation14 + $0xc4] ss:$16 sps:$4 sm:$0xff]   ;;  %v288_v30 = vlaneseq }
  0x9c   :  { %3937 = vmatmul.mubr.msk.bf16.vlgmr.msra.gmra.mxu0 %vm223_vm1, %v199_v6  ;;  %v4002_v35 = vld [vmem:[#allocation14 + $0xcc] ss:$16 sps:$4 sm:$0xff]   ;;  %v3997_v36 = vld [vmem:[#allocation14 + $0xc0] ss:$16 sps:$4 sm:$0xff]   ;;  %v4000_v37 = vld [vmem:[#allocation14 + $0xc8] ss:$16 sps:$4 sm:$0xff]  }
  0x9d   :  { %939 = vmatpush1.bf16.msra.mxu0 %v3991_v32  ;;  %v4005_v38 = vld [vmem:[#allocation14 + $0xa4] ss:$16 sps:$4 sm:$0xff]   ;;  %v4008_v39 = vld [vmem:[#allocation14 + $0xac] ss:$16 sps:$4 sm:$0xff]   ;;  %v4003_v40 = vld [vmem:[#allocation14 + $0xa0] ss:$16 sps:$4 sm:$0xff]  }
  0x9e   :  { %383 = vmatpush1.bf16.msra.mxu1 %v3975_v9  ;;  %940 = vmatprep.subr.bf16.mxu0 %v3999_v34  ;;  %v4006_v41 = vld [vmem:[#allocation14 + $0xa8] ss:$16 sps:$4 sm:$0xff]   ;;  %v4011_v42 = vld [vmem:[#allocation14 + $0x84] ss:$16 sps:$4 sm:$0xff]   ;;  %v4014_v43 = vld [vmem:[#allocation14 + $0x8c] ss:$16 sps:$4 sm:$0xff]  }
  0x9f   :  { %384 = vmatprep.subr.bf16.mxu1 %v3976_v10  ;;  %v4009_v44 = vld [vmem:[#allocation14 + $0x80] ss:$16 sps:$4 sm:$0xff]   ;;  %v4012_v45 = vld [vmem:[#allocation14 + $0x88] ss:$16 sps:$4 sm:$0xff]   ;;  %v4017_v46 = vld [vmem:[#allocation14 + $0x64] ss:$16 sps:$4 sm:$0xff]  }
  0xa0   :  { %v4020_v47 = vld [vmem:[#allocation14 + $0x6c] ss:$16 sps:$4 sm:$0xff]   ;;  %v4015_v48 = vld [vmem:[#allocation14 + $0x60] ss:$16 sps:$4 sm:$0xff]   ;;  %v4018_v49 = vld [vmem:[#allocation14 + $0x68] ss:$16 sps:$4 sm:$0xff]  }
  0xa1   :  { %941 = vmatpush1.bf16.msra.mxu0 %v3997_v36  ;;  %v4023_v50 = vld [vmem:[#allocation14 + $0x44] ss:$16 sps:$4 sm:$0xff]   ;;  %v4026_v51 = vld [vmem:[#allocation14 + $0x4c] ss:$16 sps:$4 sm:$0xff]   ;;  %v4021_v52 = vld [vmem:[#allocation14 + $0x40] ss:$16 sps:$4 sm:$0xff]  }
  0xa2   :  { %385 = vmatpush1.bf16.msra.mxu1 %v3978_v11  ;;  %942 = vmatprep.subr.bf16.mxu0 %v4005_v38  ;;  %v4024_v53 = vld [vmem:[#allocation14 + $0x48] ss:$16 sps:$4 sm:$0xff]   ;;  %v4029_v54 = vld [vmem:[#allocation14 + $0x24] ss:$16 sps:$4 sm:$0xff]   ;;  %v4032_v55 = vld [vmem:[#allocation14 + $0x2c] ss:$16 sps:$4 sm:$0xff]  }
  0xa3   :  { %386 = vmatprep.subr.bf16.mxu1 %v3979_v12  ;;  %v4027_v56 = vld [vmem:[#allocation14 + $0x20] ss:$16 sps:$4 sm:$0xff]   ;;  %v4030_v57 = vld [vmem:[#allocation14 + $0x28] ss:$16 sps:$4 sm:$0xff]   ;;  %v4035_v58 = vld [vmem:[#allocation14 + $0x4] ss:$16 sps:$4 sm:$0xff]  }
  0xa4   :  { %v4038_v59 = vld [vmem:[#allocation14 + $0xc] ss:$16 sps:$4 sm:$0xff]   ;;  %v4033_v60 = vld [vmem:[#allocation14] ss:$16 sps:$4 sm:$0xff]   ;;  %v4036_v61 = vld [vmem:[#allocation14 + $0x8] ss:$16 sps:$4 sm:$0xff]  }
  0xa5   :  { %943 = vmatpush1.bf16.msra.mxu0 %v4003_v40  ;;  %v4041_v62 = vld [vmem:[#allocation14 + $0x1e4] ss:$16 sps:$4 sm:$0xff]   ;;  %v4044_v63 = vld [vmem:[#allocation14 + $0x1ec] ss:$16 sps:$4 sm:$0xff]   ;;  %v4039_v0 = vld [vmem:[#allocation14 + $0x1e0] ss:$16 sps:$4 sm:$0xff]  }
  0xa6   :  { %387 = vmatpush1.bf16.msra.mxu1 %v3981_v13  ;;  %944 = vmatprep.subr.bf16.mxu0 %v4011_v42  ;;  %v4042_v1 = vld [vmem:[#allocation14 + $0x1e8] ss:$16 sps:$4 sm:$0xff]   ;;  %v4047_v2 = vld [vmem:[#allocation14 + $0x1c4] ss:$16 sps:$4 sm:$0xff]   ;;  %v4050_v3 = vld [vmem:[#allocation14 + $0x1cc] ss:$16 sps:$4 sm:$0xff]  }
  0xa7   :  { %388 = vmatprep.subr.bf16.mxu1 %v3982_v14  ;;  %v4045_v4 = vld [vmem:[#allocation14 + $0x1c0] ss:$16 sps:$4 sm:$0xff]   ;;  %v4048_v5 = vld [vmem:[#allocation14 + $0x1c8] ss:$16 sps:$4 sm:$0xff]   ;;  %v4053_v6 = vld [vmem:[#allocation14 + $0x1a4] ss:$16 sps:$4 sm:$0xff]  }
  0xa8   :  { %v4056_v7 = vld [vmem:[#allocation14 + $0x1ac] ss:$16 sps:$4 sm:$0xff]   ;;  %v4051_v8 = vld [vmem:[#allocation14 + $0x1a0] ss:$16 sps:$4 sm:$0xff]   ;;  %v4054_v9 = vld [vmem:[#allocation14 + $0x1a8] ss:$16 sps:$4 sm:$0xff]  }
  0xa9   :  { %945 = vmatpush1.bf16.msra.mxu0 %v4009_v44  ;;  %v4059_v10 = vld [vmem:[#allocation14 + $0x184] ss:$16 sps:$4 sm:$0xff]   ;;  %v4062_v11 = vld [vmem:[#allocation14 + $0x18c] ss:$16 sps:$4 sm:$0xff]   ;;  %v4057_v12 = vld [vmem:[#allocation14 + $0x180] ss:$16 sps:$4 sm:$0xff]  }
  0xaa   :  { %389 = vmatpush1.bf16.msra.mxu1 %v3984_v15  ;;  %946 = vmatprep.subr.bf16.mxu0 %v4017_v46  ;;  %v4060_v13 = vld [vmem:[#allocation14 + $0x188] ss:$16 sps:$4 sm:$0xff]   ;;  %v4065_v14 = vld [vmem:[#allocation14 + $0x164] ss:$16 sps:$4 sm:$0xff]   ;;  %v4068_v15 = vld [vmem:[#allocation14 + $0x16c] ss:$16 sps:$4 sm:$0xff]  }
  0xab   :  { %390 = vmatprep.subr.bf16.mxu1 %v3985_v16  ;;  %v4063_v16 = vld [vmem:[#allocation14 + $0x160] ss:$16 sps:$4 sm:$0xff]  }
  0xac   :  { %v4069_v20 = vld [vmem:[#allocation14 + $0x140] ss:$16 sps:$4 sm:$0xff]  }
  0xad   :  { %947 = vmatpush1.bf16.msra.mxu0 %v4015_v48 }
  0xae   :  { %391 = vmatpush1.bf16.msra.mxu1 %v3987_v17  ;;  %948 = vmatprep.subr.bf16.mxu0 %v4023_v50  ;;  %v4066_v17 = vld [vmem:[#allocation14 + $0x168] ss:$16 sps:$4 sm:$0xff]  }
  0xaf   :  { %392 = vmatprep.subr.bf16.mxu1 %v3988_v18  ;;  %v4071_v18 = vld [vmem:[#allocation14 + $0x144] ss:$16 sps:$4 sm:$0xff]  }
  0xb1   :  { %949 = vmatpush1.bf16.msra.mxu0 %v4021_v52 }
  0xb2   :  { %393 = vmatpush1.bf16.msra.mxu1 %v3990_v19  ;;  %950 = vmatprep.subr.bf16.mxu0 %v4029_v54  ;;  %v4074_v19 = vld [vmem:[#allocation14 + $0x14c] ss:$16 sps:$4 sm:$0xff]  }
  0xb3   :  { %979 = vmatprep.subr.bf16.mxu1 %v3996_v31  ;;  %v4532_v31 = vshrl.u32 %v288_v30, 7 }
  0xb5   :  { %951 = vmatpush1.bf16.msra.mxu0 %v4027_v56  ;;  %v4535_v32 = vsub.s32 0, %v4532_v31  ;;  %v4538_v34 = vsub.s32 1, %v4532_v31 }
  0xb6   :  { %952 = vmatprep.subr.bf16.mxu0 %v4035_v58 }
  0xb9   :  { %953 = vmatpush1.bf16.msra.mxu0 %v4033_v60 }
  0xba   :  { %954 = vmatprep.subr.bf16.mxu0 %v4041_v62 }
  0xbd   :  { %955 = vmatpush2.bf16.msra.mxu0 %v4039_v0 }
  0xbe   :  { %956 = vmatprep.subr.bf16.mxu0 %v4047_v2 }
  0xc1   :  { %957 = vmatpush2.bf16.msra.mxu0 %v4045_v4 }
  0xc2   :  { %958 = vmatprep.subr.bf16.mxu0 %v4053_v6 }
  0xc5   :  { %959 = vmatpush2.bf16.msra.mxu0 %v4051_v8 }
  0xc6   :  { %960 = vmatprep.subr.bf16.mxu0 %v4059_v10 }
  0xc9   :  { %961 = vmatpush2.bf16.msra.mxu0 %v4057_v12 }
  0xca   :  { %962 = vmatprep.subr.bf16.mxu0 %v4065_v14 }
  0xcd   :  { %963 = vmatpush2.bf16.msra.mxu0 %v4063_v16 }
  0xce   :  { %964 = vmatprep.subr.bf16.mxu0 %v4071_v18 }
  0xd1   :  { %965 = vmatpush2.bf16.msra.mxu0 %v4069_v20 }
 0x15c   :  { %v261_v22 = vpop.f32.mrf.mxu0 }
 0x15d   :  { %v262_v23 = vadd.f32 %v3581_v21, %v261_v22  ;;  %v4072_v21 = vld [vmem:[#allocation14 + $0x148] ss:$16 sps:$4 sm:$0xff]   ;;  %v4077_v22 = vld [vmem:[#allocation14 + $0x124] ss:$16 sps:$4 sm:$0xff]  }
 0x15e   :  { %v3938_v24 = vpop.f32.mrf.mxu0  ;;  %966 = vmatprep.subr.bf16.mxu0 %v4077_v22 }
 0x15f   :  { %v267_v25 = vmul.f32 0.2, %v262_v23  ;;  %v4075_v24 = vld [vmem:[#allocation14 + $0x120] ss:$16 sps:$4 sm:$0xff]  }
 0x160   :  { %v264_v26 = vpop.f32.mrf.mxu0  ;;  %967 = vmatpush2.bf16.msra.mxu0 %v4075_v24 }
 0x161   :  { %v268_v27 = vmax.f32 %v262_v23, %v267_v25  ;;  %v4080_v23 = vld [vmem:[#allocation14 + $0x12c] ss:$16 sps:$4 sm:$0xff]   ;;  %v4078_v25 = vld [vmem:[#allocation14 + $0x128] ss:$16 sps:$4 sm:$0xff]   ;;  %v4083_v26 = vld [vmem:[#allocation14 + $0x104] ss:$16 sps:$4 sm:$0xff]  }
 0x162   :  { %v3939_v28 = vpop.f32.mrf.mxu0  ;;  %968 = vmatprep.subr.bf16.mxu0 %v4083_v26 }
 0x163   :  { %v269_v29 = vpack.c.bf16 %v268_v27, %v268_v27  ;;  %v4086_v27 = vld [vmem:[#allocation14 + $0x10c] ss:$16 sps:$4 sm:$0xff]   ;;  %v4081_v28 = vld [vmem:[#allocation14 + $0x100] ss:$16 sps:$4 sm:$0xff]  }
 0x164   :  { %969 = vmatpush2.bf16.msra.mxu0 %v4081_v28 }
 0x165   :  { %411 = vmatmul.mubr.bf16.vlgmr.msra.gmra.mxu1 %v269_v29  ;;  %v4084_v29 = vld [vmem:[#allocation14 + $0x108] ss:$16 sps:$4 sm:$0xff]  }
 0x166   :  { %980 = vmatpush1.bf16.msra.mxu1 %v3994_v33  ;;  %v286_v33 = vld [vmem:[#allocation10] sm:$0x3] }
 0x167   :  { %981 = vmatprep.subr.bf16.mxu1 %v4002_v35  ;;  %v291_v35 = vrot.slane %v286_v33, %v4535_v32  ;;  %v295_v36 = vrot.slane %v286_v33, %v4538_v34 }
 0x16a   :  { %982 = vmatpush1.bf16.msra.mxu1 %v4000_v37 }
 0x16b   :  { %983 = vmatprep.subr.bf16.mxu1 %v4008_v39 }
 0x16e   :  { %984 = vmatpush1.bf16.msra.mxu1 %v4006_v41 }
 0x16f   :  { %985 = vmatprep.subr.bf16.mxu1 %v4014_v43 }
 0x172   :  { %986 = vmatpush1.bf16.msra.mxu1 %v4012_v45 }
 0x173   :  { %987 = vmatprep.subr.bf16.mxu1 %v4020_v47 }
 0x176   :  { %988 = vmatpush1.bf16.msra.mxu1 %v4018_v49 }
 0x177   :  { %989 = vmatprep.subr.bf16.mxu1 %v4026_v51 }
 0x17a   :  { %990 = vmatpush1.bf16.msra.mxu1 %v4024_v53 }
 0x17b   :  { %991 = vmatprep.subr.bf16.mxu1 %v4032_v55 }
 0x17e   :  { %992 = vmatpush1.bf16.msra.mxu1 %v4030_v57 }
 0x17f   :  { %993 = vmatprep.subr.bf16.mxu1 %v4038_v59 }
 0x182   :  { %994 = vmatpush1.bf16.msra.mxu1 %v4036_v61 }
 0x183   :  { %995 = vmatprep.subr.bf16.mxu1 %v4044_v63 }
 0x186   :  { %996 = vmatpush2.bf16.msra.mxu1 %v4042_v1 }
 0x187   :  { %997 = vmatprep.subr.bf16.mxu1 %v4050_v3 }
 0x18a   :  { %998 = vmatpush2.bf16.msra.mxu1 %v4048_v5 }
 0x18b   :  { %999 = vmatprep.subr.bf16.mxu1 %v4056_v7 }
 0x18e   :  { %1000 = vmatpush2.bf16.msra.mxu1 %v4054_v9 }
 0x18f   :  { %1001 = vmatprep.subr.bf16.mxu1 %v4062_v11 }
 0x192   :  { %1002 = vmatpush2.bf16.msra.mxu1 %v4060_v13 }
 0x193   :  { %1003 = vmatprep.subr.bf16.mxu1 %v4068_v15  ;;  %v4414_v15 = vmov 1966171168  }
 0x194   :  { %v464_v16 = vunpack.c.l.s4 %v4414_v15 }
 0x196   :  { %1004 = vmatpush2.bf16.msra.mxu1 %v4066_v17  ;;  %v465_v17 = vunpack.c.0.s8 %v464_v16 }
 0x197   :  { %1005 = vmatprep.subr.bf16.mxu1 %v4074_v19 }
 0x198   :  { %v4549_v19 = vsub.s32 %v465_v17, %v4532_v31 }
 0x19a   :  { %1006 = vmatpush2.bf16.msra.mxu1 %v4072_v21 }
 0x19b   :  { %1007 = vmatprep.subr.bf16.mxu1 %v4080_v23  ;;  %v419_v23 = vld [vmem:[#allocation11] sm:$0x3] }
 0x19e   :  { %1008 = vmatpush2.bf16.msra.mxu1 %v4078_v25 }
 0x19f   :  { %1009 = vmatprep.subr.bf16.mxu1 %v4086_v27 }
 0x1a2   :  { %1010 = vmatpush2.bf16.msra.mxu1 %v4084_v29 }
 0x225   :  { %v412_v37 = vpop.f32.mrf.mxu1 }
 0x226   :  { %v4542_v38 = vadd.f32 %v412_v37, %v291_v35  ;;  %v420_v35 = vld [vmem:[#allocation13] sm:$0x3] }
 0x227   :  { %v414_v39 = vpop.f32.mrf.mxu1 }
 0x228   :  { %v421_v40 = vrot.slane %v4542_v38, 4  ;;  %v436_v41 = vmul.f32 %v4542_v38, %v4542_v38  ;;  %v415_v42 = vadd.f32 %v414_v39, %v295_v36 }
 0x229   :  { %v416_v43 = vpop.f32.mrf.mxu1 }
 0x22a   :  { %v422_v44 = vadd.f32 %v421_v40, %v4542_v38  ;;  %v438_v45 = vrot.slane %v436_v41, 4  ;;  %v427_v46 = vrot.slane %v415_v42, 4  ;;  %v437_v47 = vmul.f32 %v415_v42, %v415_v42 }
 0x22b   :  { %v417_v48 = vpop.f32.mrf.mxu1 }
 0x22c   :  { %v423_v49 = vrot.slane %v422_v44, 2  ;;  %v439_v50 = vadd.f32 %v438_v45, %v436_v41  ;;  %v428_v51 = vadd.f32 %v427_v46, %v415_v42  ;;  %v444_v52 = vrot.slane %v437_v47, 4 }
 0x22e   :  { %v424_v53 = vadd.f32 %v423_v49, %v422_v44  ;;  %v440_v54 = vrot.slane %v439_v50, 2  ;;  %v429_v55 = vrot.slane %v428_v51, 2  ;;  %v445_v56 = vadd.f32 %v444_v52, %v437_v47  ;;  %v1280_v52 = vld [vmem:[#allocation20 + $0x1c0] sm:$0xff] }
 0x230   :  { %v425_v57 = vrot.slane %v424_v53, 1  ;;  %v441_v58 = vadd.f32 %v440_v54, %v439_v50  ;;  %v430_v59 = vadd.f32 %v429_v55, %v428_v51  ;;  %v446_v60 = vrot.slane %v445_v56, 2  ;;  %v1412_v55 = vld [vmem:[#allocation20 + $0x5e0] sm:$0xff] }
 0x232   :  { %v426_v61 = vadd.f32 %v425_v57, %v424_v53  ;;  %v442_v62 = vrot.slane %v441_v58, 1  ;;  %v431_v63 = vrot.slane %v430_v59, 1  ;;  %v447_v0 = vadd.f32 %v446_v60, %v445_v56  ;;  %v1408_v53 = vld [vmem:[#allocation20 + $0x5c0] sm:$0xff] }
 0x233   :  { %v3849_v56 = vcombine.low %v1408_v53, %v1412_v55  ;;  %v3850_v57 = vcombine.high %v1408_v53, %v1412_v55  ;;  %v1400_v60 = vld [vmem:[#allocation20 + $0x580] sm:$0xff] }
 0x234   :  { %v434_v1 = vmul.f32 0.125, %v426_v61  ;;  %v443_v2 = vadd.f32 %v442_v62, %v441_v58  ;;  %v432_v3 = vadd.f32 %v431_v63, %v430_v59  ;;  %v448_v4 = vrot.slane %v447_v0, 1  ;;  %v1272_v58 = vld [vmem:[#allocation20 + $0x180] sm:$0xff] }
 0x235   :  { %2843 = vmatprep.subr.bf16.mxu1 %v3850_v57  ;;  %v1276_v59 = vld [vmem:[#allocation20 + $0x1a0] sm:$0xff] }
 0x236   :  { %v450_v5 = vmul.f32 0.125, %v443_v2  ;;  %v452_v6 = vmul.f32 %v434_v1, %v434_v1  ;;  %v435_v7 = vmul.f32 0.125, %v432_v3  ;;  %v449_v8 = vadd.f32 %v448_v4, %v447_v0  ;;  %v1404_v62 = vld [vmem:[#allocation20 + $0x5a0] sm:$0xff] }
 0x237   :  { %v3714_v61 = vcombine.high %v1272_v58, %v1276_v59  ;;  %v3713_v63 = vcombine.low %v1272_v58, %v1276_v59  ;;  %v3841_v0 = vcombine.low %v1400_v60, %v1404_v62  ;;  %v1264_v2 = vld [vmem:[#allocation20 + $0x140] sm:$0xff] }
 0x238   :  { %v454_v9 = vsub.f32 %v450_v5, %v452_v6  ;;  %v451_v10 = vmul.f32 0.125, %v449_v8  ;;  %v453_v11 = vmul.f32 %v435_v7, %v435_v7  ;;  %v1268_v3 = vld [vmem:[#allocation20 + $0x160] sm:$0xff] }
 0x239   :  { %v1392_v4 = vld [vmem:[#allocation20 + $0x540] sm:$0xff]  ;;  %v3706_v5 = vcombine.high %v1264_v2, %v1268_v3 }
 0x23a   :  { %v456_v12 = vadd.f32 0.8, %v454_v9  ;;  %v455_v13 = vsub.f32 %v451_v10, %v453_v11  ;;  %v1396_v6 = vld [vmem:[#allocation20 + $0x560] sm:$0xff] }
 0x23b   :  { %v3833_v8 = vcombine.low %v1392_v4, %v1396_v6  ;;  %v3834_v9 = vcombine.high %v1392_v4, %v1396_v6  ;;  %v1256_v10 = vld [vmem:[#allocation20 + $0x100] sm:$0xff] }
 0x23c   :  { %v457_v14 = vadd.f32 0.8, %v455_v13  ;;  %4087 = vrsqrt.f32 %v456_v12  ;;  %v1260_v11 = vld [vmem:[#allocation20 + $0x120] sm:$0xff] }
 0x23d   :  { %v1384_v12 = vld [vmem:[#allocation20 + $0x500] sm:$0xff]  ;;  %v3698_v13 = vcombine.high %v1256_v10, %v1260_v11  ;;  %v3697_v15 = vcombine.low %v1256_v10, %v1260_v11 }
 0x23e   :  { %4089 = vrsqrt.f32 %v457_v14  ;;  %v1388_v14 = vld [vmem:[#allocation20 + $0x520] sm:$0xff] }
 0x23f   :  { %v3825_v16 = vcombine.low %v1384_v12, %v1388_v14  ;;  %v3826_v17 = vcombine.high %v1384_v12, %v1388_v14  ;;  %v1344_v55 = vld [vmem:[#allocation20 + $0x3c0] sm:$0xff] }
 0x240   :  { %v1476_v58 = vld [vmem:[#allocation20 + $0x7e0] sm:$0xff] }
 0x241   :  { %v1328_v6 = vld [vmem:[#allocation20 + $0x340] sm:$0xff] }
 0x242   :  { %v1460_v10 = vld [vmem:[#allocation20 + $0x760] sm:$0xff] }
 0x243   :  { %v1320_v14 = vld [vmem:[#allocation20 + $0x300] sm:$0xff] }
 0x249   :  { %v4088_v18 = vpop.eup %4087 }
 0x24b   :  { %v4090_v20 = vpop.eup %4089 }
 0x24c   :  { %v462_v21 = vcombine.low %v4088_v18, %v4090_v20  ;;  %v1248_v18 = vld [vmem:[#allocation20 + $0xc0] sm:$0xff] }
 0x24d   :  { %v1252_v20 = vld [vmem:[#allocation20 + $0xe0] sm:$0xff] }
 0x24e   :  { %v469_v22 = vrot.slane %v462_v21, %v4549_v19  ;;  %v1376_v21 = vld [vmem:[#allocation20 + $0x4c0] sm:$0xff] }
 0x250   :  { %v476_v24 = vrot.slane %v469_v22, %v4549_v19  ;;  %v3690_v22 = vcombine.high %v1248_v18, %v1252_v20 }
 0x252   :  { %v478_v25 = vmul.f32 %v476_v24, %v419_v23  ;;  %v1380_v23 = vld [vmem:[#allocation20 + $0x4e0] sm:$0xff]  ;;  %v3689_v24 = vcombine.low %v1248_v18, %v1252_v20 }
 0x253   :  { %v1452_v18 = vld [vmem:[#allocation20 + $0x720] sm:$0xff] }
 0x254   :  { %v483_v26 = vrot.slane %v478_v25, %v4535_v32  ;;  %v487_v27 = vrot.slane %v478_v25, %v4538_v34  ;;  %v3817_v25 = vcombine.low %v1376_v21, %v1380_v23 }
 0x256   :  { %v490_v28 = vmul.f32 %v483_v26, %v434_v1  ;;  %v491_v29 = vmul.f32 %v487_v27, %v435_v7  ;;  %v512_v39 = vmul.f32 %v487_v27, %v415_v42  ;;  %v511_v41 = vmul.f32 %v483_v26, %v4542_v38  ;;  %v1284_v42 = vld [vmem:[#allocation20 + $0x1e0] sm:$0xff] }
 0x257   :  { %v3722_v54 = vcombine.high %v1280_v52, %v1284_v42  ;;  %v3721_v38 = vcombine.low %v1280_v52, %v1284_v42  ;;  %v3842_v1 = vcombine.high %v1400_v60, %v1404_v62  ;;  %v3705_v7 = vcombine.low %v1264_v2, %v1268_v3  ;;  %v1240_v27 = vld [vmem:[#allocation20 + $0x80] sm:$0xff] }
 0x258   :  { %v494_v30 = vcombine.low %v490_v28, %v491_v29  ;;  %v3818_v26 = vcombine.high %v1376_v21, %v1380_v23  ;;  %v1244_v28 = vld [vmem:[#allocation20 + $0xa0] sm:$0xff] }
 0x259   :  { %2802 = vmatprep.subr.bf16.mxu0 %v3722_v54  ;;  %v1368_v29 = vld [vmem:[#allocation20 + $0x480] sm:$0xff] }
 0x25a   :  { %v501_v33 = vrot.slane %v494_v30, %v4549_v19  ;;  %v3682_v30 = vcombine.high %v1240_v27, %v1244_v28  ;;  %v1356_v52 = vld [vmem:[#allocation20 + $0x420] sm:$0xff] }
 0x25b   :  { %v1336_v62 = vld [vmem:[#allocation20 + $0x380] sm:$0xff] }
 0x25c   :  { %v508_v36 = vrot.slane %v501_v33, %v4549_v19  ;;  %v1372_v33 = vld [vmem:[#allocation20 + $0x4a0] sm:$0xff] }
 0x25d   :  { %v1468_v2 = vld [vmem:[#allocation20 + $0x7a0] sm:$0xff] }
 0x25e   :  { %v510_v37 = vsub.f32 %v420_v35, %v508_v36  ;;  %v3681_v35 = vcombine.low %v1240_v27, %v1244_v28  ;;  %v3809_v36 = vcombine.low %v1368_v29, %v1372_v33  ;;  %v1312_v23 = vld [vmem:[#allocation20 + $0x2c0] sm:$0xff] }
 0x25f   :  { %v1444_v28 = vld [vmem:[#allocation20 + $0x6e0] sm:$0xff] }
 0x260   :  { %v521_v40 = vrot.slane %v510_v37, %v4538_v34  ;;  %v517_v43 = vrot.slane %v510_v37, %v4535_v32  ;;  %v3810_v37 = vcombine.high %v1368_v29, %v1372_v33  ;;  %v1304_v29 = vld [vmem:[#allocation20 + $0x280] sm:$0xff] }
 0x262   :  { %v525_v44 = vadd.f32 %v521_v40, %v512_v39  ;;  %v524_v45 = vadd.f32 %v517_v43, %v511_v41  ;;  %v1232_v39 = vld [vmem:[#allocation20 + $0x40] sm:$0xff] }
 0x263   :  { %v1236_v40 = vld [vmem:[#allocation20 + $0x60] sm:$0xff] }
 0x264   :  { %v527_v46 = vmul.f32 0.2, %v525_v44  ;;  %v526_v47 = vmul.f32 0.2, %v524_v45  ;;  %v1360_v41 = vld [vmem:[#allocation20 + $0x440] sm:$0xff]  ;;  %v3674_v43 = vcombine.high %v1232_v39, %v1236_v40 }
 0x266   :  { %v529_v48 = vmax.f32 %v525_v44, %v527_v46  ;;  %v528_v49 = vmax.f32 %v524_v45, %v526_v47  ;;  %v1364_v44 = vld [vmem:[#allocation20 + $0x460] sm:$0xff]  ;;  %v3673_v45 = vcombine.low %v1232_v39, %v1236_v40 }
 0x267   :  { %v3801_v46 = vcombine.low %v1360_v41, %v1364_v44  ;;  %v3802_v47 = vcombine.high %v1360_v41, %v1364_v44  ;;  %v1436_v39 = vld [vmem:[#allocation20 + $0x6a0] sm:$0xff] }
 0x268   :  { %v531_v50 = vpack.c.bf16 %v529_v48, %v529_v48  ;;  %v530_v51 = vpack.c.bf16 %v528_v49, %v528_v49  ;;  %v1224_v48 = vld [vmem:[#allocation20] sm:$0xff] }
 0x269   :  { %v1228_v49 = vld [vmem:[#allocation20 + $0x20] sm:$0xff] }
 0x26a   :  { %970 = vmatprep.mubr.bf16.mxu0 %v531_v50  ;;  %1011 = vmatprep.mubr.bf16.mxu1 %v531_v50  ;;  %v1352_v50 = vld [vmem:[#allocation20 + $0x400] sm:$0xff]  ;;  %v3665_v42 = vcombine.low %v1224_v48, %v1228_v49 }
 0x26b   :  { %971 = vmatmul.mubr.bf16.vlgmr.msra.gmra.mxu0 %v530_v51  ;;  %1012 = vmatmul.mubr.bf16.vlgmr.msra.gmra.mxu1 %v530_v51  ;;  %v3666_v51 = vcombine.high %v1224_v48, %v1228_v49  ;;  %v3793_v53 = vcombine.low %v1352_v50, %v1356_v52  ;;  %v3794_v54 = vcombine.high %v1352_v50, %v1356_v52  ;;  %v1296_v40 = vld [vmem:[#allocation20 + $0x240] sm:$0xff] }
 0x26c   :  { %2803 = vmatpush1.bf16.msra.mxu0 %v3721_v38  ;;  %2844 = vmatpush1.bf16.msra.mxu1 %v3849_v56  ;;  %v1348_v38 = vld [vmem:[#allocation20 + $0x3e0] sm:$0xff] }
 0x26d   :  { %2804 = vmatprep.subr.bf16.mxu0 %v3714_v61  ;;  %2845 = vmatprep.subr.bf16.mxu1 %v3842_v1  ;;  %v1472_v56 = vld [vmem:[#allocation20 + $0x7c0] sm:$0xff]  ;;  %v3786_v57 = vcombine.high %v1344_v55, %v1348_v38  ;;  %v3785_v59 = vcombine.low %v1344_v55, %v1348_v38 }
 0x26e   :  { %v3913_v60 = vcombine.low %v1472_v56, %v1476_v58  ;;  %v3914_v61 = vcombine.high %v1472_v56, %v1476_v58  ;;  %v1424_v44 = vld [vmem:[#allocation20 + $0x640] sm:$0xff]  ;;  %v4560_v58 = vld [vmem:[#allocation20 + $0x1c8] sm:$0xff] }
 0x26f   :  { %v1288_v50 = vld [vmem:[#allocation20 + $0x200] sm:$0xff] }
 0x270   :  { %2805 = vmatpush1.bf16.msra.mxu0 %v3713_v63  ;;  %2846 = vmatpush1.bf16.msra.mxu1 %v3841_v0  ;;  %v1340_v63 = vld [vmem:[#allocation20 + $0x3a0] sm:$0xff] }
 0x271   :  { %2806 = vmatprep.subr.bf16.mxu0 %v3706_v5  ;;  %2847 = vmatprep.subr.bf16.mxu1 %v3834_v9  ;;  %v1464_v0 = vld [vmem:[#allocation20 + $0x780] sm:$0xff]  ;;  %v3778_v1 = vcombine.high %v1336_v62, %v1340_v63  ;;  %v3777_v3 = vcombine.low %v1336_v62, %v1340_v63  ;;  %v4568_v62 = vld [vmem:[#allocation20 + $0x5e8] sm:$0xff] }
 0x272   :  { %v3905_v4 = vcombine.low %v1464_v0, %v1468_v2  ;;  %v3906_v5 = vcombine.high %v1464_v0, %v1468_v2  ;;  %v1416_v52 = vld [vmem:[#allocation20 + $0x600] sm:$0xff]  ;;  %v4577_v2 = vsub.s32 2, %v4532_v31 }
 0x274   :  { %2807 = vmatpush1.bf16.msra.mxu0 %v3705_v7  ;;  %2848 = vmatpush1.bf16.msra.mxu1 %v3833_v8  ;;  %v1332_v7 = vld [vmem:[#allocation20 + $0x360] sm:$0xff] }
 0x275   :  { %2808 = vmatprep.subr.bf16.mxu0 %v3698_v13  ;;  %2849 = vmatprep.subr.bf16.mxu1 %v3826_v17  ;;  %v1456_v8 = vld [vmem:[#allocation20 + $0x740] sm:$0xff]  ;;  %v3770_v9 = vcombine.high %v1328_v6, %v1332_v7  ;;  %v3769_v11 = vcombine.low %v1328_v6, %v1332_v7 }
 0x276   :  { %v3897_v12 = vcombine.low %v1456_v8, %v1460_v10  ;;  %v3898_v13 = vcombine.high %v1456_v8, %v1460_v10 }
 0x278   :  { %2809 = vmatpush1.bf16.msra.mxu0 %v3697_v15  ;;  %2850 = vmatpush1.bf16.msra.mxu1 %v3825_v16  ;;  %v1324_v15 = vld [vmem:[#allocation20 + $0x320] sm:$0xff] }
 0x279   :  { %2810 = vmatprep.subr.bf16.mxu0 %v3690_v22  ;;  %2851 = vmatprep.subr.bf16.mxu1 %v3818_v26  ;;  %v1448_v16 = vld [vmem:[#allocation20 + $0x700] sm:$0xff]  ;;  %v3762_v17 = vcombine.high %v1320_v14, %v1324_v15  ;;  %v3761_v20 = vcombine.low %v1320_v14, %v1324_v15 }
 0x27a   :  { %v3889_v21 = vcombine.low %v1448_v16, %v1452_v18  ;;  %v3890_v22 = vcombine.high %v1448_v16, %v1452_v18 }
 0x27c   :  { %2811 = vmatpush1.bf16.msra.mxu0 %v3689_v24  ;;  %2852 = vmatpush1.bf16.msra.mxu1 %v3817_v25  ;;  %v1316_v24 = vld [vmem:[#allocation20 + $0x2e0] sm:$0xff] }
 0x27d   :  { %2812 = vmatprep.subr.bf16.mxu0 %v3682_v30  ;;  %2853 = vmatprep.subr.bf16.mxu1 %v3810_v37  ;;  %v1440_v25 = vld [vmem:[#allocation20 + $0x6c0] sm:$0xff]  ;;  %v3753_v26 = vcombine.low %v1312_v23, %v1316_v24  ;;  %v3754_v27 = vcombine.high %v1312_v23, %v1316_v24 }
 0x27e   :  { %v1308_v30 = vld [vmem:[#allocation20 + $0x2a0] sm:$0xff]  ;;  %v3881_v33 = vcombine.low %v1440_v25, %v1444_v28 }
 0x27f   :  { %v1432_v37 = vld [vmem:[#allocation20 + $0x680] sm:$0xff] }
 0x280   :  { %2813 = vmatpush1.bf16.msra.mxu0 %v3681_v35  ;;  %2854 = vmatpush1.bf16.msra.mxu1 %v3809_v36  ;;  %v3882_v35 = vcombine.high %v1440_v25, %v1444_v28  ;;  %v3746_v36 = vcombine.high %v1304_v29, %v1308_v30  ;;  %v3874_v41 = vcombine.high %v1432_v37, %v1436_v39 }
 0x281   :  { %2814 = vmatprep.subr.bf16.mxu0 %v3674_v43  ;;  %2855 = vmatprep.subr.bf16.mxu1 %v3802_v47  ;;  %v1300_v43 = vld [vmem:[#allocation20 + $0x260] sm:$0xff]  ;;  %v3873_v47 = vcombine.low %v1432_v37, %v1436_v39 }
 0x282   :  { %v3738_v48 = vcombine.high %v1296_v40, %v1300_v43 }
 0x284   :  { %2815 = vmatpush1.bf16.msra.mxu0 %v3673_v45  ;;  %2856 = vmatpush1.bf16.msra.mxu1 %v3801_v46  ;;  %v1428_v45 = vld [vmem:[#allocation20 + $0x660] sm:$0xff]  ;;  %v3745_v46 = vcombine.low %v1304_v29, %v1308_v30 }
 0x285   :  { %2816 = vmatprep.subr.bf16.mxu0 %v3666_v51  ;;  %2857 = vmatprep.subr.bf16.mxu1 %v3794_v54  ;;  %v3866_v49 = vcombine.high %v1424_v44, %v1428_v45  ;;  %v1292_v51 = vld [vmem:[#allocation20 + $0x220] sm:$0xff]  ;;  %v3865_v54 = vcombine.low %v1424_v44, %v1428_v45 }
 0x286   :  { %v3730_v55 = vcombine.high %v1288_v50, %v1292_v51  ;;  %v3729_v56 = vcombine.low %v1288_v50, %v1292_v51 }
 0x288   :  { %2817 = vmatpush1.bf16.msra.mxu0 %v3665_v42  ;;  %2858 = vmatpush1.bf16.msra.mxu1 %v3793_v53  ;;  %v1420_v42 = vld [vmem:[#allocation20 + $0x620] sm:$0xff]  ;;  %v3737_v53 = vcombine.low %v1296_v40, %v1300_v43 }
 0x289   :  { %2818 = vmatprep.subr.bf16.mxu0 %v3786_v57  ;;  %2859 = vmatprep.subr.bf16.mxu1 %v3914_v61  ;;  %v3858_v38 = vcombine.high %v1416_v52, %v1420_v42  ;;  %v3857_v57 = vcombine.low %v1416_v52, %v1420_v42 }
 0x28c   :  { %2819 = vmatpush2.bf16.msra.mxu0 %v3785_v59  ;;  %2860 = vmatpush2.bf16.msra.mxu1 %v3913_v60  ;;  %v4562_v59 = vld [vmem:[#allocation20 + $0x1e8] sm:$0xff] }
 0x28d   :  { %2820 = vmatprep.subr.bf16.mxu0 %v3778_v1  ;;  %2861 = vmatprep.subr.bf16.mxu1 %v3906_v5  ;;  %v4564_v60 = vld [vmem:[#allocation20 + $0x5c8] sm:$0xff]  ;;  %v3724_v61 = vcombine.high %v4560_v58, %v4562_v59  ;;  %v3723_v63 = vcombine.low %v4560_v58, %v4562_v59 }
 0x28e   :  { %v3851_v0 = vcombine.low %v4564_v60, %v4568_v62  ;;  %v3852_v1 = vcombine.high %v4564_v60, %v4568_v62 }
 0x290   :  { %2821 = vmatpush2.bf16.msra.mxu0 %v3777_v3  ;;  %2862 = vmatpush2.bf16.msra.mxu1 %v3905_v4  ;;  %v596_v3 = vld [vmem:[#allocation16] sm:$0xf]  ;;  %v4580_v4 = vsub.s32 3, %v4532_v31 }
 0x291   :  { %2822 = vmatprep.subr.bf16.mxu0 %v3770_v9  ;;  %2863 = vmatprep.subr.bf16.mxu1 %v3898_v13  ;;  %v601_v5 = vrot.slane %v596_v3, %v4535_v32  ;;  %v609_v6 = vrot.slane %v596_v3, %v4577_v2  ;;  %v605_v9 = vrot.slane %v596_v3, %v4538_v34 }
 0x292   :  { %v613_v10 = vrot.slane %v596_v3, %v4580_v4 }
 0x294   :  { %2823 = vmatpush2.bf16.msra.mxu0 %v3769_v11  ;;  %2864 = vmatpush2.bf16.msra.mxu1 %v3897_v12 }
 0x295   :  { %2824 = vmatprep.subr.bf16.mxu0 %v3762_v17  ;;  %2865 = vmatprep.subr.bf16.mxu1 %v3890_v22 }
 0x298   :  { %2825 = vmatpush2.bf16.msra.mxu0 %v3761_v20  ;;  %2866 = vmatpush2.bf16.msra.mxu1 %v3889_v21 }
 0x299   :  { %2826 = vmatprep.subr.bf16.mxu0 %v3754_v27  ;;  %2867 = vmatprep.subr.bf16.mxu1 %v3882_v35 }
 0x29c   :  { %2827 = vmatpush2.bf16.msra.mxu0 %v3753_v26  ;;  %2868 = vmatpush2.bf16.msra.mxu1 %v3881_v33 }
 0x29d   :  { %2828 = vmatprep.subr.bf16.mxu0 %v3746_v36  ;;  %2869 = vmatprep.subr.bf16.mxu1 %v3874_v41 }
 0x2a0   :  { %2829 = vmatpush2.bf16.msra.mxu0 %v3745_v46  ;;  %2870 = vmatpush2.bf16.msra.mxu1 %v3873_v47 }
 0x2a1   :  { %2830 = vmatprep.subr.bf16.mxu0 %v3738_v48  ;;  %2871 = vmatprep.subr.bf16.mxu1 %v3866_v49 }
 0x2a4   :  { %2831 = vmatpush2.bf16.msra.mxu0 %v3737_v53  ;;  %2872 = vmatpush2.bf16.msra.mxu1 %v3865_v54 }
 0x2a5   :  { %2832 = vmatprep.subr.bf16.mxu0 %v3730_v55  ;;  %2873 = vmatprep.subr.bf16.mxu1 %v3858_v38 }
 0x2a8   :  { %2833 = vmatpush2.bf16.msra.mxu0 %v3729_v56  ;;  %2874 = vmatpush2.bf16.msra.mxu1 %v3857_v57 }
 0x2a9   :  { %2884 = vmatprep.subr.bf16.mxu0 %v3724_v61  ;;  %2925 = vmatprep.subr.bf16.mxu1 %v3852_v1 }
 0x32b   :  { %v972_v7 = vpop.f32.mrf.mxu0  ;;  %v1013_v8 = vpop.f32.mrf.mxu1 }
 0x32c   :  { %v4586_v11 = vadd.f32 %v972_v7, %v601_v5  ;;  %v4588_v12 = vadd.f32 %v1013_v8, %v609_v6 }
 0x32d   :  { %v974_v13 = vpop.f32.mrf.mxu0  ;;  %v1015_v14 = vpop.f32.mrf.mxu1 }
 0x32e   :  { %v1022_v15 = vrot.slane %v4586_v11, 4  ;;  %v1050_v16 = vmul.f32 %v4586_v11, %v4586_v11  ;;  %v1034_v17 = vrot.slane %v4588_v12, 4  ;;  %v1052_v18 = vmul.f32 %v4588_v12, %v4588_v12 }
 0x32f   :  { %v4596_v20 = vadd.f32 %v974_v13, %v605_v9  ;;  %v4598_v21 = vadd.f32 %v1015_v14, %v613_v10  ;;  %v976_v22 = vpop.f32.mrf.mxu0  ;;  %v1017_v23 = vpop.f32.mrf.mxu1 }
 0x330   :  { %v1023_v24 = vadd.f32 %v1022_v15, %v4586_v11  ;;  %v1054_v25 = vrot.slane %v1050_v16, 4  ;;  %v1035_v26 = vadd.f32 %v1034_v17, %v4588_v12  ;;  %v1066_v27 = vrot.slane %v1052_v18, 4 }
 0x331   :  { %v1028_v28 = vrot.slane %v4596_v20, 4  ;;  %v1051_v29 = vmul.f32 %v4596_v20, %v4596_v20  ;;  %v1040_v30 = vrot.slane %v4598_v21, 4  ;;  %v1053_v33 = vmul.f32 %v4598_v21, %v4598_v21  ;;  %v977_v35 = vpop.f32.mrf.mxu0  ;;  %v1018_v36 = vpop.f32.mrf.mxu1 }
 0x332   :  { %v1024_v37 = vrot.slane %v1023_v24, 2  ;;  %v1055_v39 = vadd.f32 %v1054_v25, %v1050_v16  ;;  %v1036_v40 = vrot.slane %v1035_v26, 2  ;;  %v1067_v41 = vadd.f32 %v1066_v27, %v1052_v18 }
 0x333   :  { %v1029_v43 = vadd.f32 %v1028_v28, %v4596_v20  ;;  %v1060_v44 = vrot.slane %v1051_v29, 4  ;;  %v1041_v45 = vadd.f32 %v1040_v30, %v4598_v21  ;;  %v1072_v46 = vrot.slane %v1053_v33, 4 }
 0x334   :  { %v1025_v47 = vadd.f32 %v1024_v37, %v1023_v24  ;;  %v1056_v48 = vrot.slane %v1055_v39, 2  ;;  %v1037_v49 = vadd.f32 %v1036_v40, %v1035_v26  ;;  %v1068_v50 = vrot.slane %v1067_v41, 2 }
 0x335   :  { %v1030_v51 = vrot.slane %v1029_v43, 2  ;;  %v1061_v52 = vadd.f32 %v1060_v44, %v1051_v29  ;;  %v1042_v42 = vrot.slane %v1041_v45, 2  ;;  %v1073_v53 = vadd.f32 %v1072_v46, %v1053_v33 }
 0x336   :  { %v1026_v54 = vrot.slane %v1025_v47, 1  ;;  %v1057_v55 = vadd.f32 %v1056_v48, %v1055_v39  ;;  %v1038_v38 = vrot.slane %v1037_v49, 1  ;;  %v1069_v56 = vadd.f32 %v1068_v50, %v1067_v41 }
 0x337   :  { %v1031_v57 = vadd.f32 %v1030_v51, %v1029_v43  ;;  %v1062_v61 = vrot.slane %v1061_v52, 2  ;;  %v1043_v1 = vadd.f32 %v1042_v42, %v1041_v45  ;;  %v1074_v3 = vrot.slane %v1073_v53, 2 }
 0x338   :  { %v1027_v5 = vadd.f32 %v1026_v54, %v1025_v47  ;;  %v1058_v6 = vrot.slane %v1057_v55, 1  ;;  %v1039_v7 = vadd.f32 %v1038_v38, %v1037_v49  ;;  %v1070_v8 = vrot.slane %v1069_v56, 1 }
 0x339   :  { %v1032_v9 = vrot.slane %v1031_v57, 1  ;;  %v1063_v10 = vadd.f32 %v1062_v61, %v1061_v52  ;;  %v1044_v13 = vrot.slane %v1043_v1, 1  ;;  %v1075_v14 = vadd.f32 %v1074_v3, %v1073_v53  ;;  %v1020_v61 = vld [vmem:[#allocation17] sm:$0xf] }
 0x33a   :  { %v1046_v15 = vmul.f32 0.125, %v1027_v5  ;;  %v1059_v16 = vadd.f32 %v1058_v6, %v1057_v55  ;;  %v1048_v17 = vmul.f32 0.125, %v1039_v7  ;;  %v1071_v18 = vadd.f32 %v1070_v8, %v1069_v56 }
 0x33b   :  { %v1033_v22 = vadd.f32 %v1032_v9, %v1031_v57  ;;  %v1064_v23 = vrot.slane %v1063_v10, 1  ;;  %v1045_v24 = vadd.f32 %v1044_v13, %v1043_v1  ;;  %v1076_v25 = vrot.slane %v1075_v14, 1 }
 0x33c   :  { %v1078_v26 = vmul.f32 0.125, %v1059_v16  ;;  %v1082_v27 = vmul.f32 %v1046_v15, %v1046_v15  ;;  %v1080_v28 = vmul.f32 0.125, %v1071_v18  ;;  %v1084_v29 = vmul.f32 %v1048_v17, %v1048_v17 }
 0x33d   :  { %v1047_v30 = vmul.f32 0.125, %v1033_v22  ;;  %v1065_v33 = vadd.f32 %v1064_v23, %v1063_v10  ;;  %v1049_v35 = vmul.f32 0.125, %v1045_v24  ;;  %v1077_v36 = vadd.f32 %v1076_v25, %v1075_v14  ;;  %v1021_v25 = vld [vmem:[#allocation19] sm:$0xf] }
 0x33e   :  { %v1086_v37 = vsub.f32 %v1078_v26, %v1082_v27  ;;  %v1088_v39 = vsub.f32 %v1080_v28, %v1084_v29 }
 0x33f   :  { %v1079_v40 = vmul.f32 0.125, %v1065_v33  ;;  %v1083_v41 = vmul.f32 %v1047_v30, %v1047_v30  ;;  %v1081_v43 = vmul.f32 0.125, %v1077_v36  ;;  %v1085_v44 = vmul.f32 %v1049_v35, %v1049_v35 }
 0x340   :  { %v1090_v45 = vadd.f32 0.8, %v1086_v37  ;;  %v1092_v46 = vadd.f32 0.8, %v1088_v39 }
 0x341   :  { %v1087_v47 = vsub.f32 %v1079_v40, %v1083_v41  ;;  %v1089_v48 = vsub.f32 %v1081_v43, %v1085_v44 }
 0x342   :  { %4091 = vrsqrt.f32 %v1090_v45 }
 0x343   :  { %v1091_v49 = vadd.f32 0.8, %v1087_v47  ;;  %v1093_v50 = vadd.f32 0.8, %v1089_v48  ;;  %4093 = vrsqrt.f32 %v1092_v46  ;;  %v1277_v48 = vld [vmem:[#allocation20 + $0x1a8] sm:$0xff] }
 0x345   :  { %4095 = vrsqrt.f32 %v1091_v49  ;;  %v1401_v49 = vld [vmem:[#allocation20 + $0x588] sm:$0xff] }
 0x346   :  { %4097 = vrsqrt.f32 %v1093_v50  ;;  %v1405_v50 = vld [vmem:[#allocation20 + $0x5a8] sm:$0xff] }
 0x34f   :  { %v4092_v51 = vpop.eup %4091 }
 0x350   :  { %v4094_v52 = vpop.eup %4093 }
 0x352   :  { %v4096_v42 = vpop.eup %4095 }
 0x353   :  { %v4098_v53 = vpop.eup %4097  ;;  %v1102_v54 = vcombine.low %v4092_v51, %v4096_v42 }
 0x354   :  { %v1103_v55 = vcombine.low %v4094_v52, %v4098_v53 }
 0x355   :  { %v1110_v38 = vrot.slane %v1102_v54, %v4549_v19  ;;  %v1265_v54 = vld [vmem:[#allocation20 + $0x148] sm:$0xff] }
 0x356   :  { %v1117_v56 = vrot.slane %v1103_v55, %v4549_v19 }
 0x358   :  { %v1118_v57 = vcombine.low %v1110_v38, %v1117_v56  ;;  %v3844_v38 = vcombine.high %v1401_v49, %v1405_v50  ;;  %v1269_v56 = vld [vmem:[#allocation20 + $0x168] sm:$0xff] }
 0x359   :  { %v3707_v58 = vcombine.low %v1265_v54, %v1269_v56 }
 0x35a   :  { %v1125_v1 = vrot.slane %v1118_v57, %v4549_v19  ;;  %v1393_v57 = vld [vmem:[#allocation20 + $0x548] sm:$0xff] }
 0x35c   :  { %v1127_v3 = vmul.f32 %v1125_v1, %v1020_v61  ;;  %v1397_v61 = vld [vmem:[#allocation20 + $0x568] sm:$0xff] }
 0x35d   :  { %v3835_v59 = vcombine.low %v1393_v57, %v1397_v61 }
 0x35e   :  { %v1140_v5 = vrot.slane %v1127_v3, %v4577_v2  ;;  %v1144_v6 = vrot.slane %v1127_v3, %v4580_v4  ;;  %v1132_v7 = vrot.slane %v1127_v3, %v4535_v32  ;;  %v1136_v8 = vrot.slane %v1127_v3, %v4538_v34 }
 0x35f   :  { %v3843_v3 = vcombine.low %v1401_v49, %v1405_v50  ;;  %v1473_v49 = vld [vmem:[#allocation20 + $0x7c8] sm:$0xff] }
 0x360   :  { %v1151_v9 = vmul.f32 %v1140_v5, %v1048_v17  ;;  %v1152_v10 = vmul.f32 %v1144_v6, %v1049_v35  ;;  %v1149_v13 = vmul.f32 %v1132_v7, %v1046_v15  ;;  %v1150_v14 = vmul.f32 %v1136_v8, %v1047_v30  ;;  %v1477_v50 = vld [vmem:[#allocation20 + $0x7e8] sm:$0xff] }
 0x361   :  { %v1186_v28 = vmul.f32 %v1144_v6, %v4598_v21  ;;  %v1184_v29 = vmul.f32 %v1136_v8, %v4596_v20  ;;  %v1183_v17 = vmul.f32 %v1132_v7, %v4586_v11  ;;  %v1185_v15 = vmul.f32 %v1140_v5, %v4588_v12  ;;  %v1273_v12 = vld [vmem:[#allocation20 + $0x188] sm:$0xff] }
 0x362   :  { %v1158_v16 = vcombine.low %v1151_v9, %v1152_v10  ;;  %v1157_v18 = vcombine.low %v1149_v13, %v1150_v14  ;;  %v3716_v55 = vcombine.high %v1273_v12, %v1277_v48  ;;  %v3715_v1 = vcombine.low %v1273_v12, %v1277_v48  ;;  %v1257_v7 = vld [vmem:[#allocation20 + $0x108] sm:$0xff] }
 0x363   :  { %v3708_v5 = vcombine.high %v1265_v54, %v1269_v56  ;;  %v3836_v6 = vcombine.high %v1393_v57, %v1397_v61  ;;  %v1261_v8 = vld [vmem:[#allocation20 + $0x128] sm:$0xff]  ;;  %v3916_v56 = vcombine.high %v1473_v49, %v1477_v50 }
 0x364   :  { %v1172_v22 = vrot.slane %v1158_v16, %v4549_v19  ;;  %v1165_v23 = vrot.slane %v1157_v18, %v4549_v19  ;;  %v1385_v9 = vld [vmem:[#allocation20 + $0x508] sm:$0xff]  ;;  %v3700_v60 = vcombine.high %v1257_v7, %v1261_v8  ;;  %v3699_v16 = vcombine.low %v1257_v7, %v1261_v8 }
 0x365   :  { %v1389_v10 = vld [vmem:[#allocation20 + $0x528] sm:$0xff] }
 0x366   :  { %v1173_v24 = vcombine.low %v1165_v23, %v1172_v22  ;;  %v3828_v62 = vcombine.high %v1385_v9, %v1389_v10  ;;  %v1377_v13 = vld [vmem:[#allocation20 + $0x4c8] sm:$0xff]  ;;  %v3827_v18 = vcombine.low %v1385_v9, %v1389_v10 }
 0x367   :  { %v1381_v14 = vld [vmem:[#allocation20 + $0x4e8] sm:$0xff] }
 0x368   :  { %v1180_v26 = vrot.slane %v1173_v24, %v4549_v19  ;;  %v3820_v23 = vcombine.high %v1377_v13, %v1381_v14  ;;  %v1241_v24 = vld [vmem:[#allocation20 + $0x88] sm:$0xff] }
 0x369   :  { %v1349_v48 = vld [vmem:[#allocation20 + $0x3e8] sm:$0xff] }
 0x36a   :  { %v1182_v27 = vsub.f32 %v1021_v25, %v1180_v26  ;;  %v1245_v25 = vld [vmem:[#allocation20 + $0xa8] sm:$0xff] }
 0x36b   :  { %v1369_v26 = vld [vmem:[#allocation20 + $0x488] sm:$0xff] }
 0x36c   :  { %v1195_v30 = vrot.slane %v1182_v27, %v4538_v34  ;;  %v1203_v33 = vrot.slane %v1182_v27, %v4580_v4  ;;  %v1191_v35 = vrot.slane %v1182_v27, %v4535_v32  ;;  %v1199_v36 = vrot.slane %v1182_v27, %v4577_v2  ;;  %v1373_v27 = vld [vmem:[#allocation20 + $0x4a8] sm:$0xff] }
 0x36d   :  { %v1337_v57 = vld [vmem:[#allocation20 + $0x388] sm:$0xff] }
 0x36e   :  { %v1209_v37 = vadd.f32 %v1195_v30, %v1184_v29  ;;  %v1211_v39 = vadd.f32 %v1203_v33, %v1186_v28  ;;  %v1208_v40 = vadd.f32 %v1191_v35, %v1183_v17  ;;  %v1210_v41 = vadd.f32 %v1199_v36, %v1185_v15  ;;  %v1233_v30 = vld [vmem:[#allocation20 + $0x48] sm:$0xff] }
 0x36f   :  { %v3819_v29 = vcombine.low %v1377_v13, %v1381_v14  ;;  %v3684_v17 = vcombine.high %v1241_v24, %v1245_v25  ;;  %v3812_v15 = vcombine.high %v1369_v26, %v1373_v27  ;;  %v1237_v33 = vld [vmem:[#allocation20 + $0x68] sm:$0xff] }
 0x370   :  { %v1213_v43 = vmul.f32 0.2, %v1209_v37  ;;  %v1215_v21 = vmul.f32 0.2, %v1211_v39  ;;  %v1212_v44 = vmul.f32 0.2, %v1208_v40 }
 0x371   :  { %v1214_v20 = vmul.f32 0.2, %v1210_v41  ;;  %v1361_v35 = vld [vmem:[#allocation20 + $0x448] sm:$0xff] }
 0x372   :  { %v1217_v45 = vmax.f32 %v1209_v37, %v1213_v43  ;;  %v1219_v11 = vmax.f32 %v1211_v39, %v1215_v21  ;;  %v1216_v46 = vmax.f32 %v1208_v40, %v1212_v44  ;;  %v1365_v36 = vld [vmem:[#allocation20 + $0x468] sm:$0xff]  ;;  %v3683_v37 = vcombine.low %v1241_v24, %v1245_v25 }
 0x373   :  { %v1218_v47 = vmax.f32 %v1210_v41, %v1214_v20  ;;  %v3811_v39 = vcombine.low %v1369_v26, %v1373_v27  ;;  %v3676_v40 = vcombine.high %v1233_v30, %v1237_v33  ;;  %v3804_v41 = vcombine.high %v1361_v35, %v1365_v36  ;;  %v1225_v43 = vld [vmem:[#allocation20 + $0x8] sm:$0xff] }
 0x374   :  { %v4628_v51 = vpack.c.bf16 %v1217_v45, %v1217_v45  ;;  %v4630_v52 = vpack.c.bf16 %v1219_v11, %v1219_v11  ;;  %v4632_v42 = vpack.c.bf16 %v1216_v46, %v1216_v46  ;;  %v1229_v21 = vld [vmem:[#allocation20 + $0x28] sm:$0xff]  ;;  %v3675_v45 = vcombine.low %v1233_v30, %v1237_v33 }
 0x375   :  { %v4634_v53 = vpack.c.bf16 %v1218_v47, %v1218_v47  ;;  %v1353_v44 = vld [vmem:[#allocation20 + $0x408] sm:$0xff]  ;;  %v3803_v11 = vcombine.low %v1361_v35, %v1365_v36  ;;  %v3668_v46 = vcombine.high %v1225_v43, %v1229_v21  ;;  %v3667_v54 = vcombine.low %v1225_v43, %v1229_v21 }
 0x376   :  { %2834 = vmatprep.mubr.bf16.mxu0 %v4628_v51  ;;  %2875 = vmatprep.mubr.bf16.mxu1 %v4630_v52  ;;  %v1357_v20 = vld [vmem:[#allocation20 + $0x428] sm:$0xff] }
 0x377   :  { %2835 = vmatmul.mubr.bf16.vlgmr.msra.gmra.mxu0 %v4632_v42  ;;  %2876 = vmatmul.mubr.bf16.vlgmr.msra.gmra.mxu1 %v4634_v53  ;;  %v3796_v12 = vcombine.high %v1353_v44, %v1357_v20  ;;  %v1345_v47 = vld [vmem:[#allocation20 + $0x3c8] sm:$0xff] }
 0x378   :  { %2885 = vmatpush1.bf16.msra.mxu0 %v3723_v63  ;;  %2926 = vmatpush1.bf16.msra.mxu1 %v3851_v0  ;;  %v1249_v63 = vld [vmem:[#allocation20 + $0xc8] sm:$0xff] }
 0x379   :  { %2916 = vmatprep.mubr.bf16.mxu0 %v4628_v51  ;;  %2957 = vmatprep.mubr.bf16.mxu1 %v4630_v52  ;;  %v1253_v0 = vld [vmem:[#allocation20 + $0xe8] sm:$0xff] }
 0x37a   :  { %2886 = vmatprep.subr.bf16.mxu0 %v3716_v55  ;;  %2927 = vmatprep.subr.bf16.mxu1 %v3844_v38  ;;  %v3692_v22 = vcombine.high %v1249_v63, %v1253_v0  ;;  %v3691_v28 = vcombine.low %v1249_v63, %v1253_v0  ;;  %v3795_v55 = vcombine.low %v1353_v44, %v1357_v20  ;;  %v1341_v61 = vld [vmem:[#allocation20 + $0x3a8] sm:$0xff] }
 0x37b   :  { %v3788_v38 = vcombine.high %v1345_v47, %v1349_v48  ;;  %v3780_v7 = vcombine.high %v1337_v57, %v1341_v61  ;;  %v1329_v9 = vld [vmem:[#allocation20 + $0x348] sm:$0xff] }
 0x37c   :  { %2887 = vmatpush1.bf16.msra.mxu0 %v3715_v1  ;;  %2928 = vmatpush1.bf16.msra.mxu1 %v3843_v3  ;;  %v1465_v1 = vld [vmem:[#allocation20 + $0x788] sm:$0xff] }
 0x37d   :  { %2888 = vmatprep.subr.bf16.mxu0 %v3708_v5  ;;  %2929 = vmatprep.subr.bf16.mxu1 %v3836_v6  ;;  %v1469_v3 = vld [vmem:[#allocation20 + $0x7a8] sm:$0xff]  ;;  %v3787_v5 = vcombine.low %v1345_v47, %v1349_v48  ;;  %v3915_v6 = vcombine.low %v1473_v49, %v1477_v50 }
 0x37e   :  { %v3908_v8 = vcombine.high %v1465_v1, %v1469_v3  ;;  %v1333_v10 = vld [vmem:[#allocation20 + $0x368] sm:$0xff] }
 0x37f   :  { %v3772_v63 = vcombine.high %v1329_v9, %v1333_v10  ;;  %v1321_v13 = vld [vmem:[#allocation20 + $0x308] sm:$0xff] }
 0x380   :  { %2889 = vmatpush1.bf16.msra.mxu0 %v3707_v58  ;;  %2930 = vmatpush1.bf16.msra.mxu1 %v3835_v59  ;;  %v1457_v58 = vld [vmem:[#allocation20 + $0x748] sm:$0xff] }
 0x381   :  { %2890 = vmatprep.subr.bf16.mxu0 %v3700_v60  ;;  %2931 = vmatprep.subr.bf16.mxu1 %v3828_v62  ;;  %v1461_v59 = vld [vmem:[#allocation20 + $0x768] sm:$0xff]  ;;  %v3779_v60 = vcombine.low %v1337_v57, %v1341_v61  ;;  %v3907_v62 = vcombine.low %v1465_v1, %v1469_v3  ;;  %v1282_v1 = vld [vmem:[#allocation20 + $0x1d0] sm:$0xff] }
 0x382   :  { %v3900_v0 = vcombine.high %v1457_v58, %v1461_v59  ;;  %v1325_v14 = vld [vmem:[#allocation20 + $0x328] sm:$0xff]  ;;  %v1286_v3 = vld [vmem:[#allocation20 + $0x1f0] sm:$0xff] }
 0x383   :  { %v3764_v24 = vcombine.high %v1321_v13, %v1325_v14  ;;  %v1313_v26 = vld [vmem:[#allocation20 + $0x2c8] sm:$0xff] }
 0x384   :  { %2891 = vmatpush1.bf16.msra.mxu0 %v3699_v16  ;;  %2932 = vmatpush1.bf16.msra.mxu1 %v3827_v18  ;;  %v1449_v16 = vld [vmem:[#allocation20 + $0x708] sm:$0xff] }
 0x385   :  { %2892 = vmatprep.subr.bf16.mxu0 %v3692_v22  ;;  %2933 = vmatprep.subr.bf16.mxu1 %v3820_v23  ;;  %v1453_v18 = vld [vmem:[#allocation20 + $0x728] sm:$0xff]  ;;  %v3771_v22 = vcombine.low %v1329_v9, %v1333_v10  ;;  %v3899_v23 = vcombine.low %v1457_v58, %v1461_v59  ;;  %v3726_v9 = vcombine.high %v1282_v1, %v1286_v3  ;;  %v1274_v58 = vld [vmem:[#allocation20 + $0x190] sm:$0xff] }
 0x386   :  { %v3892_v25 = vcombine.high %v1449_v16, %v1453_v18  ;;  %v1317_v27 = vld [vmem:[#allocation20 + $0x2e8] sm:$0xff]  ;;  %v1278_v59 = vld [vmem:[#allocation20 + $0x1b0] sm:$0xff] }
 0x387   :  { %v3756_v30 = vcombine.high %v1313_v26, %v1317_v27  ;;  %v1305_v35 = vld [vmem:[#allocation20 + $0x288] sm:$0xff] }
 0x388   :  { %2893 = vmatpush1.bf16.msra.mxu0 %v3691_v28  ;;  %2934 = vmatpush1.bf16.msra.mxu1 %v3819_v29  ;;  %v1441_v28 = vld [vmem:[#allocation20 + $0x6c8] sm:$0xff] }
 0x389   :  { %2894 = vmatprep.subr.bf16.mxu0 %v3684_v17  ;;  %2935 = vmatprep.subr.bf16.mxu1 %v3812_v15  ;;  %v1445_v29 = vld [vmem:[#allocation20 + $0x6e8] sm:$0xff]  ;;  %v3763_v17 = vcombine.low %v1321_v13, %v1325_v14  ;;  %v3891_v15 = vcombine.low %v1449_v16, %v1453_v18  ;;  %v3718_v13 = vcombine.high %v1274_v58, %v1278_v59  ;;  %v1266_v16 = vld [vmem:[#allocation20 + $0x150] sm:$0xff] }
 0x38a   :  { %v3884_v33 = vcombine.high %v1441_v28, %v1445_v29  ;;  %v1309_v36 = vld [vmem:[#allocation20 + $0x2a8] sm:$0xff]  ;;  %v1270_v18 = vld [vmem:[#allocation20 + $0x170] sm:$0xff] }
 0x38b   :  { %v3748_v43 = vcombine.high %v1305_v35, %v1309_v36  ;;  %v1297_v44 = vld [vmem:[#allocation20 + $0x248] sm:$0xff] }
 0x38c   :  { %2895 = vmatpush1.bf16.msra.mxu0 %v3683_v37  ;;  %2936 = vmatpush1.bf16.msra.mxu1 %v3811_v39  ;;  %v1433_v37 = vld [vmem:[#allocation20 + $0x688] sm:$0xff] }
 0x38d   :  { %2896 = vmatprep.subr.bf16.mxu0 %v3676_v40  ;;  %2937 = vmatprep.subr.bf16.mxu1 %v3804_v41  ;;  %v1437_v39 = vld [vmem:[#allocation20 + $0x6a8] sm:$0xff]  ;;  %v3755_v40 = vcombine.low %v1313_v26, %v1317_v27  ;;  %v3883_v41 = vcombine.low %v1441_v28, %v1445_v29  ;;  %v3710_v26 = vcombine.high %v1266_v16, %v1270_v18  ;;  %v1258_v28 = vld [vmem:[#allocation20 + $0x110] sm:$0xff] }
 0x38e   :  { %v3876_v21 = vcombine.high %v1433_v37, %v1437_v39  ;;  %v1301_v20 = vld [vmem:[#allocation20 + $0x268] sm:$0xff]  ;;  %v1262_v29 = vld [vmem:[#allocation20 + $0x130] sm:$0xff] }
 0x38f   :  { %v3740_v47 = vcombine.high %v1297_v44, %v1301_v20  ;;  %v1289_v49 = vld [vmem:[#allocation20 + $0x208] sm:$0xff] }
 0x390   :  { %2897 = vmatpush1.bf16.msra.mxu0 %v3675_v45  ;;  %2938 = vmatpush1.bf16.msra.mxu1 %v3803_v11  ;;  %v1425_v45 = vld [vmem:[#allocation20 + $0x648] sm:$0xff] }
 0x391   :  { %2898 = vmatprep.subr.bf16.mxu0 %v3668_v46  ;;  %2939 = vmatprep.subr.bf16.mxu1 %v3796_v12  ;;  %v1429_v11 = vld [vmem:[#allocation20 + $0x668] sm:$0xff]  ;;  %v3747_v46 = vcombine.low %v1305_v35, %v1309_v36  ;;  %v3875_v12 = vcombine.low %v1433_v37, %v1437_v39  ;;  %v3702_v35 = vcombine.high %v1258_v28, %v1262_v29  ;;  %v1250_v37 = vld [vmem:[#allocation20 + $0xd0] sm:$0xff] }
 0x392   :  { %v3868_v48 = vcombine.high %v1425_v45, %v1429_v11  ;;  %v1293_v50 = vld [vmem:[#allocation20 + $0x228] sm:$0xff]  ;;  %v1254_v39 = vld [vmem:[#allocation20 + $0xf0] sm:$0xff] }
 0x393   :  { %v3732_v57 = vcombine.high %v1289_v49, %v1293_v50 }
 0x394   :  { %2899 = vmatpush1.bf16.msra.mxu0 %v3667_v54  ;;  %2940 = vmatpush1.bf16.msra.mxu1 %v3795_v55  ;;  %v1417_v54 = vld [vmem:[#allocation20 + $0x608] sm:$0xff] }
 0x395   :  { %2900 = vmatprep.subr.bf16.mxu0 %v3788_v38  ;;  %2941 = vmatprep.subr.bf16.mxu1 %v3916_v56  ;;  %v1421_v55 = vld [vmem:[#allocation20 + $0x628] sm:$0xff]  ;;  %v3739_v38 = vcombine.low %v1297_v44, %v1301_v20  ;;  %v3867_v56 = vcombine.low %v1425_v45, %v1429_v11  ;;  %v3694_v44 = vcombine.high %v1250_v37, %v1254_v39  ;;  %v1242_v45 = vld [vmem:[#allocation20 + $0x90] sm:$0xff] }
 0x396   :  { %v3860_v61 = vcombine.high %v1417_v54, %v1421_v55  ;;  %v1246_v11 = vld [vmem:[#allocation20 + $0xb0] sm:$0xff] }
 0x398   :  { %2901 = vmatpush2.bf16.msra.mxu0 %v3787_v5  ;;  %2942 = vmatpush2.bf16.msra.mxu1 %v3915_v6  ;;  %v1410_v5 = vld [vmem:[#allocation20 + $0x5d0] sm:$0xff] }
 0x399   :  { %2902 = vmatprep.subr.bf16.mxu0 %v3780_v7  ;;  %2943 = vmatprep.subr.bf16.mxu1 %v3908_v8  ;;  %v1414_v6 = vld [vmem:[#allocation20 + $0x5f0] sm:$0xff]  ;;  %v3731_v7 = vcombine.low %v1289_v49, %v1293_v50  ;;  %v3859_v8 = vcombine.low %v1417_v54, %v1421_v55  ;;  %v3686_v49 = vcombine.high %v1242_v45, %v1246_v11 }
 0x39a   :  { %v3854_v10 = vcombine.high %v1410_v5, %v1414_v6  ;;  %v1234_v54 = vld [vmem:[#allocation20 + $0x50] sm:$0xff] }
 0x39b   :  { %v1238_v55 = vld [vmem:[#allocation20 + $0x70] sm:$0xff] }
 0x39c   :  { %2903 = vmatpush2.bf16.msra.mxu0 %v3779_v60  ;;  %2944 = vmatpush2.bf16.msra.mxu1 %v3907_v62  ;;  %v1402_v60 = vld [vmem:[#allocation20 + $0x590] sm:$0xff] }
 0x39d   :  { %2904 = vmatprep.subr.bf16.mxu0 %v3772_v63  ;;  %2945 = vmatprep.subr.bf16.mxu1 %v3900_v0  ;;  %v1406_v62 = vld [vmem:[#allocation20 + $0x5b0] sm:$0xff]  ;;  %v3725_v63 = vcombine.low %v1282_v1, %v1286_v3  ;;  %v3853_v0 = vcombine.low %v1410_v5, %v1414_v6  ;;  %v3678_v1 = vcombine.high %v1234_v54, %v1238_v55 }
 0x39e   :  { %v3846_v14 = vcombine.high %v1402_v60, %v1406_v62  ;;  %v1226_v5 = vld [vmem:[#allocation20 + $0x10] sm:$0xff] }
 0x39f   :  { %v1230_v6 = vld [vmem:[#allocation20 + $0x30] sm:$0xff] }
 0x3a0   :  { %2905 = vmatpush2.bf16.msra.mxu0 %v3771_v22  ;;  %2946 = vmatpush2.bf16.msra.mxu1 %v3899_v23  ;;  %v1394_v22 = vld [vmem:[#allocation20 + $0x550] sm:$0xff] }
 0x3a1   :  { %2906 = vmatprep.subr.bf16.mxu0 %v3764_v24  ;;  %2947 = vmatprep.subr.bf16.mxu1 %v3892_v25  ;;  %v1398_v23 = vld [vmem:[#allocation20 + $0x570] sm:$0xff]  ;;  %v3717_v24 = vcombine.low %v1274_v58, %v1278_v59  ;;  %v3845_v25 = vcombine.low %v1402_v60, %v1406_v62  ;;  %v3670_v58 = vcombine.high %v1226_v5, %v1230_v6 }
 0x3a2   :  { %v3838_v27 = vcombine.high %v1394_v22, %v1398_v23  ;;  %v1346_v60 = vld [vmem:[#allocation20 + $0x3d0] sm:$0xff] }
 0x3a3   :  { %v1350_v62 = vld [vmem:[#allocation20 + $0x3f0] sm:$0xff] }
 0x3a4   :  { %2907 = vmatpush2.bf16.msra.mxu0 %v3763_v17  ;;  %2948 = vmatpush2.bf16.msra.mxu1 %v3891_v15  ;;  %v1386_v17 = vld [vmem:[#allocation20 + $0x510] sm:$0xff] }
 0x3a5   :  { %2908 = vmatprep.subr.bf16.mxu0 %v3756_v30  ;;  %2949 = vmatprep.subr.bf16.mxu1 %v3884_v33  ;;  %v1390_v15 = vld [vmem:[#allocation20 + $0x530] sm:$0xff]  ;;  %v3709_v30 = vcombine.low %v1266_v16, %v1270_v18  ;;  %v3837_v33 = vcombine.low %v1394_v22, %v1398_v23  ;;  %v3790_v16 = vcombine.high %v1346_v60, %v1350_v62 }
 0x3a6   :  { %v3830_v36 = vcombine.high %v1386_v17, %v1390_v15  ;;  %v1338_v22 = vld [vmem:[#allocation20 + $0x390] sm:$0xff] }
 0x3a7   :  { %v1342_v23 = vld [vmem:[#allocation20 + $0x3b0] sm:$0xff] }
 0x3a8   :  { %2909 = vmatpush2.bf16.msra.mxu0 %v3755_v40  ;;  %2950 = vmatpush2.bf16.msra.mxu1 %v3883_v41  ;;  %v1378_v40 = vld [vmem:[#allocation20 + $0x4d0] sm:$0xff] }
 0x3a9   :  { %2910 = vmatprep.subr.bf16.mxu0 %v3748_v43  ;;  %2951 = vmatprep.subr.bf16.mxu1 %v3876_v21  ;;  %v1382_v41 = vld [vmem:[#allocation20 + $0x4f0] sm:$0xff]  ;;  %v3701_v43 = vcombine.low %v1258_v28, %v1262_v29  ;;  %v3829_v21 = vcombine.low %v1386_v17, %v1390_v15  ;;  %v3782_v28 = vcombine.high %v1338_v22, %v1342_v23 }
 0x3aa   :  { %v3822_v20 = vcombine.high %v1378_v40, %v1382_v41  ;;  %v1330_v17 = vld [vmem:[#allocation20 + $0x350] sm:$0xff] }
 0x3ab   :  { %v1334_v15 = vld [vmem:[#allocation20 + $0x370] sm:$0xff] }
 0x3ac   :  { %2911 = vmatpush2.bf16.msra.mxu0 %v3747_v46  ;;  %2952 = vmatpush2.bf16.msra.mxu1 %v3875_v12  ;;  %v1370_v46 = vld [vmem:[#allocation20 + $0x490] sm:$0xff] }
 0x3ad   :  { %2912 = vmatprep.subr.bf16.mxu0 %v3740_v47  ;;  %2953 = vmatprep.subr.bf16.mxu1 %v3868_v48  ;;  %v1374_v12 = vld [vmem:[#allocation20 + $0x4b0] sm:$0xff]  ;;  %v3693_v47 = vcombine.low %v1250_v37, %v1254_v39  ;;  %v3821_v48 = vcombine.low %v1378_v40, %v1382_v41  ;;  %v3774_v37 = vcombine.high %v1330_v17, %v1334_v15 }
 0x3ae   :  { %v3814_v50 = vcombine.high %v1370_v46, %v1374_v12  ;;  %v1322_v40 = vld [vmem:[#allocation20 + $0x310] sm:$0xff] }
 0x3af   :  { %v1326_v41 = vld [vmem:[#allocation20 + $0x330] sm:$0xff] }
 0x3b0   :  { %2913 = vmatpush2.bf16.msra.mxu0 %v3739_v38  ;;  %2954 = vmatpush2.bf16.msra.mxu1 %v3867_v56  ;;  %v1362_v38 = vld [vmem:[#allocation20 + $0x450] sm:$0xff] }
 0x3b1   :  { %2914 = vmatprep.subr.bf16.mxu0 %v3732_v57  ;;  %2955 = vmatprep.subr.bf16.mxu1 %v3860_v61  ;;  %v1366_v56 = vld [vmem:[#allocation20 + $0x470] sm:$0xff]  ;;  %v3685_v57 = vcombine.low %v1242_v45, %v1246_v11  ;;  %v3813_v61 = vcombine.low %v1370_v46, %v1374_v12  ;;  %v3766_v45 = vcombine.high %v1322_v40, %v1326_v41 }
 0x3b2   :  { %v3806_v3 = vcombine.high %v1362_v38, %v1366_v56  ;;  %v1314_v46 = vld [vmem:[#allocation20 + $0x2d0] sm:$0xff] }
 0x3b3   :  { %v1318_v12 = vld [vmem:[#allocation20 + $0x2f0] sm:$0xff] }
 0x3b4   :  { %2915 = vmatpush2.bf16.msra.mxu0 %v3731_v7  ;;  %2956 = vmatpush2.bf16.msra.mxu1 %v3859_v8  ;;  %v1354_v7 = vld [vmem:[#allocation20 + $0x410] sm:$0xff] }
 0x3b5   :  { %2966 = vmatprep.subr.bf16.mxu0 %v3726_v9  ;;  %3007 = vmatprep.subr.bf16.mxu1 %v3854_v10  ;;  %v1358_v8 = vld [vmem:[#allocation20 + $0x430] sm:$0xff]  ;;  %v3677_v9 = vcombine.low %v1234_v54, %v1238_v55  ;;  %v3805_v10 = vcombine.low %v1362_v38, %v1366_v56  ;;  %v3758_v54 = vcombine.high %v1314_v46, %v1318_v12 }
 0x3b6   :  { %v3798_v59 = vcombine.high %v1354_v7, %v1358_v8  ;;  %v1306_v38 = vld [vmem:[#allocation20 + $0x290] sm:$0xff] }
 0x3b7   :  { %2917 = vmatmul.mubr.bf16.vlgmr.msra.gmra.mxu0 %v4632_v42  ;;  %2958 = vmatmul.mubr.bf16.vlgmr.msra.gmra.mxu1 %v4634_v53  ;;  %v1310_v56 = vld [vmem:[#allocation20 + $0x2b0] sm:$0xff] }
 0x3b8   :  { %2967 = vmatpush1.bf16.msra.mxu0 %v3725_v63  ;;  %2998 = vmatprep.mubr.bf16.mxu0 %v4628_v51  ;;  %v1474_v63 = vld [vmem:[#allocation20 + $0x7d0] sm:$0xff] }
 0x3b9   :  { %3008 = vmatpush1.bf16.msra.mxu1 %v3853_v0  ;;  %3039 = vmatprep.mubr.bf16.mxu1 %v4630_v52  ;;  %v1478_v0 = vld [vmem:[#allocation20 + $0x7f0] sm:$0xff] }
 0x3ba   :  { %2968 = vmatprep.subr.bf16.mxu0 %v3718_v13  ;;  %3009 = vmatprep.subr.bf16.mxu1 %v3846_v14  ;;  %v3669_v13 = vcombine.low %v1226_v5, %v1230_v6  ;;  %v3797_v14 = vcombine.low %v1354_v7, %v1358_v8  ;;  %v3918_v18 = vcombine.high %v1474_v63, %v1478_v0  ;;  %v1298_v7 = vld [vmem:[#allocation20 + $0x250] sm:$0xff] }
 0x3bb   :  { %v3750_v5 = vcombine.high %v1306_v38, %v1310_v56  ;;  %v1302_v8 = vld [vmem:[#allocation20 + $0x270] sm:$0xff] }
 0x3bc   :  { %2969 = vmatpush1.bf16.msra.mxu0 %v3717_v24  ;;  %v1466_v24 = vld [vmem:[#allocation20 + $0x790] sm:$0xff] }
 0x3bd   :  { %3010 = vmatpush1.bf16.msra.mxu1 %v3845_v25  ;;  %2970 = vmatprep.subr.bf16.mxu0 %v3710_v26  ;;  %v1470_v25 = vld [vmem:[#allocation20 + $0x7b0] sm:$0xff]  ;;  %v3789_v26 = vcombine.low %v1346_v60, %v1350_v62  ;;  %v3742_v60 = vcombine.high %v1298_v7, %v1302_v8 }
 0x3be   :  { %3011 = vmatprep.subr.bf16.mxu1 %v3838_v27  ;;  %v3917_v27 = vcombine.low %v1474_v63, %v1478_v0  ;;  %v3910_v29 = vcombine.high %v1466_v24, %v1470_v25  ;;  %v1290_v63 = vld [vmem:[#allocation20 + $0x210] sm:$0xff] }
 0x3bf   :  { %v1294_v0 = vld [vmem:[#allocation20 + $0x230] sm:$0xff] }
 0x3c0   :  { %2971 = vmatpush1.bf16.msra.mxu0 %v3709_v30  ;;  %v1458_v30 = vld [vmem:[#allocation20 + $0x750] sm:$0xff] }
 0x3c1   :  { %3012 = vmatpush1.bf16.msra.mxu1 %v3837_v33  ;;  %2972 = vmatprep.subr.bf16.mxu0 %v3702_v35  ;;  %v1462_v33 = vld [vmem:[#allocation20 + $0x770] sm:$0xff]  ;;  %v3781_v35 = vcombine.low %v1338_v22, %v1342_v23  ;;  %v3734_v22 = vcombine.high %v1290_v63, %v1294_v0 }
 0x3c2   :  { %3013 = vmatprep.subr.bf16.mxu1 %v3830_v36  ;;  %v3909_v36 = vcombine.low %v1466_v24, %v1470_v25  ;;  %v3902_v39 = vcombine.high %v1458_v30, %v1462_v33  ;;  %v1283_v24 = vld [vmem:[#allocation20 + $0x1d8] sm:$0xff] }
 0x3c3   :  { %v1287_v25 = vld [vmem:[#allocation20 + $0x1f8] sm:$0xff] }
 0x3c4   :  { %2973 = vmatpush1.bf16.msra.mxu0 %v3701_v43  ;;  %v1450_v43 = vld [vmem:[#allocation20 + $0x710] sm:$0xff] }
 0x3c5   :  { %3014 = vmatpush1.bf16.msra.mxu1 %v3829_v21  ;;  %2974 = vmatprep.subr.bf16.mxu0 %v3694_v44  ;;  %v1454_v21 = vld [vmem:[#allocation20 + $0x730] sm:$0xff]  ;;  %v3773_v44 = vcombine.low %v1330_v17, %v1334_v15  ;;  %v3728_v17 = vcombine.high %v1283_v24, %v1287_v25 }
 0x3c6   :  { %3015 = vmatprep.subr.bf16.mxu1 %v3822_v20  ;;  %v3901_v20 = vcombine.low %v1458_v30, %v1462_v33  ;;  %v3894_v11 = vcombine.high %v1450_v43, %v1454_v21  ;;  %v1275_v30 = vld [vmem:[#allocation20 + $0x198] sm:$0xff] }
 0x3c7   :  { %v1279_v33 = vld [vmem:[#allocation20 + $0x1b8] sm:$0xff] }
 0x3c8   :  { %2975 = vmatpush1.bf16.msra.mxu0 %v3693_v47  ;;  %v1442_v47 = vld [vmem:[#allocation20 + $0x6d0] sm:$0xff] }
 0x3c9   :  { %3016 = vmatpush1.bf16.msra.mxu1 %v3821_v48  ;;  %2976 = vmatprep.subr.bf16.mxu0 %v3686_v49  ;;  %v1446_v48 = vld [vmem:[#allocation20 + $0x6f0] sm:$0xff]  ;;  %v3765_v49 = vcombine.low %v1322_v40, %v1326_v41  ;;  %v3720_v40 = vcombine.high %v1275_v30, %v1279_v33  ;;  %v1267_v41 = vld [vmem:[#allocation20 + $0x158] sm:$0xff] }
 0x3ca   :  { %3017 = vmatprep.subr.bf16.mxu1 %v3814_v50  ;;  %v3893_v50 = vcombine.low %v1450_v43, %v1454_v21  ;;  %v3886_v55 = vcombine.high %v1442_v47, %v1446_v48  ;;  %v1271_v43 = vld [vmem:[#allocation20 + $0x178] sm:$0xff] }
 0x3cc   :  { %2977 = vmatpush1.bf16.msra.mxu0 %v3685_v57  ;;  %v1434_v57 = vld [vmem:[#allocation20 + $0x690] sm:$0xff] }
 0x3cd   :  { %3018 = vmatpush1.bf16.msra.mxu1 %v3813_v61  ;;  %2978 = vmatprep.subr.bf16.mxu0 %v3678_v1  ;;  %v1438_v61 = vld [vmem:[#allocation20 + $0x6b0] sm:$0xff]  ;;  %v3757_v1 = vcombine.low %v1314_v46, %v1318_v12  ;;  %v3712_v46 = vcombine.high %v1267_v41, %v1271_v43 }
 0x3ce   :  { %3019 = vmatprep.subr.bf16.mxu1 %v3806_v3  ;;  %v3885_v3 = vcombine.low %v1442_v47, %v1446_v48  ;;  %v3878_v6 = vcombine.high %v1434_v57, %v1438_v61  ;;  %v1259_v47 = vld [vmem:[#allocation20 + $0x118] sm:$0xff] }
 0x3cf   :  { %v1263_v48 = vld [vmem:[#allocation20 + $0x138] sm:$0xff] }
 0x3d0   :  { %2979 = vmatpush1.bf16.msra.mxu0 %v3677_v9  ;;  %v1426_v9 = vld [vmem:[#allocation20 + $0x650] sm:$0xff] }
 0x3d1   :  { %3020 = vmatpush1.bf16.msra.mxu1 %v3805_v10  ;;  %2980 = vmatprep.subr.bf16.mxu0 %v3670_v58  ;;  %v1430_v10 = vld [vmem:[#allocation20 + $0x670] sm:$0xff]  ;;  %v3749_v58 = vcombine.low %v1306_v38, %v1310_v56  ;;  %v3704_v38 = vcombine.high %v1259_v47, %v1263_v48  ;;  %v1251_v56 = vld [vmem:[#allocation20 + $0xd8] sm:$0xff] }
 0x3d2   :  { %3021 = vmatprep.subr.bf16.mxu1 %v3798_v59  ;;  %v3877_v59 = vcombine.low %v1434_v57, %v1438_v61  ;;  %v3870_v62 = vcombine.high %v1426_v9, %v1430_v10  ;;  %v1255_v57 = vld [vmem:[#allocation20 + $0xf8] sm:$0xff] }
 0x3d3   :  { %v1379_v61 = vld [vmem:[#allocation20 + $0x4d8] sm:$0xff] }
 0x3d4   :  { %2981 = vmatpush1.bf16.msra.mxu0 %v3669_v13  ;;  %v1418_v13 = vld [vmem:[#allocation20 + $0x610] sm:$0xff] }
 0x3d5   :  { %3022 = vmatpush1.bf16.msra.mxu1 %v3797_v14  ;;  %2982 = vmatprep.subr.bf16.mxu0 %v3790_v16  ;;  %v1422_v14 = vld [vmem:[#allocation20 + $0x630] sm:$0xff]  ;;  %v3741_v16 = vcombine.low %v1298_v7, %v1302_v8  ;;  %v1243_v7 = vld [vmem:[#allocation20 + $0x98] sm:$0xff] }
 0x3d6   :  { %3023 = vmatprep.subr.bf16.mxu1 %v3918_v18  ;;  %v3869_v18 = vcombine.low %v1426_v9, %v1430_v10  ;;  %v3862_v23 = vcombine.high %v1418_v13, %v1422_v14  ;;  %v1247_v8 = vld [vmem:[#allocation20 + $0xb8] sm:$0xff] }
 0x3d7   :  { %v1371_v9 = vld [vmem:[#allocation20 + $0x498] sm:$0xff] }
 0x3d8   :  { %2983 = vmatpush2.bf16.msra.mxu0 %v3789_v26  ;;  %v1411_v26 = vld [vmem:[#allocation20 + $0x5d8] sm:$0xff] }
 0x3d9   :  { %3024 = vmatpush2.bf16.msra.mxu1 %v3917_v27  ;;  %2984 = vmatprep.subr.bf16.mxu0 %v3782_v28  ;;  %v1415_v27 = vld [vmem:[#allocation20 + $0x5f8] sm:$0xff]  ;;  %v3733_v28 = vcombine.low %v1290_v63, %v1294_v0 }
 0x3da   :  { %3025 = vmatprep.subr.bf16.mxu1 %v3910_v29  ;;  %v3861_v29 = vcombine.low %v1418_v13, %v1422_v14  ;;  %v3856_v15 = vcombine.high %v1411_v26, %v1415_v27  ;;  %v1375_v10 = vld [vmem:[#allocation20 + $0x4b8] sm:$0xff] }
 0x3db   :  { %v1235_v63 = vld [vmem:[#allocation20 + $0x58] sm:$0xff] }
 0x3dc   :  { %2985 = vmatpush2.bf16.msra.mxu0 %v3781_v35  ;;  %v3727_v35 = vcombine.low %v1283_v24, %v1287_v25  ;;  %v1239_v0 = vld [vmem:[#allocation20 + $0x78] sm:$0xff] }
 0x3dd   :  { %3026 = vmatpush2.bf16.msra.mxu1 %v3909_v36  ;;  %2986 = vmatprep.subr.bf16.mxu0 %v3774_v37  ;;  %v1403_v36 = vld [vmem:[#allocation20 + $0x598] sm:$0xff] }
 0x3de   :  { %3027 = vmatprep.subr.bf16.mxu1 %v3902_v39  ;;  %v1407_v37 = vld [vmem:[#allocation20 + $0x5b8] sm:$0xff]  ;;  %v3855_v39 = vcombine.low %v1411_v26, %v1415_v27 }
 0x3df   :  { %v3848_v21 = vcombine.high %v1403_v36, %v1407_v37  ;;  %v1363_v13 = vld [vmem:[#allocation20 + $0x458] sm:$0xff] }
 0x3e0   :  { %2987 = vmatpush2.bf16.msra.mxu0 %v3773_v44  ;;  %v1395_v44 = vld [vmem:[#allocation20 + $0x558] sm:$0xff] }
 0x3e1   :  { %3028 = vmatpush2.bf16.msra.mxu1 %v3901_v20  ;;  %2988 = vmatprep.subr.bf16.mxu0 %v3766_v45  ;;  %v1399_v20 = vld [vmem:[#allocation20 + $0x578] sm:$0xff]  ;;  %v3719_v45 = vcombine.low %v1275_v30, %v1279_v33 }
 0x3e2   :  { %3029 = vmatprep.subr.bf16.mxu1 %v3894_v11  ;;  %v3847_v11 = vcombine.low %v1403_v36, %v1407_v37  ;;  %v3840_v12 = vcombine.high %v1395_v44, %v1399_v20  ;;  %v1367_v14 = vld [vmem:[#allocation20 + $0x478] sm:$0xff] }
 0x3e3   :  { %v1227_v24 = vld [vmem:[#allocation20 + $0x18] sm:$0xff] }
 0x3e4   :  { %2989 = vmatpush2.bf16.msra.mxu0 %v3765_v49  ;;  %v1387_v49 = vld [vmem:[#allocation20 + $0x518] sm:$0xff] }
 0x3e5   :  { %3030 = vmatpush2.bf16.msra.mxu1 %v3893_v50  ;;  %2990 = vmatprep.subr.bf16.mxu0 %v3758_v54  ;;  %v1391_v50 = vld [vmem:[#allocation20 + $0x538] sm:$0xff]  ;;  %v3711_v54 = vcombine.low %v1267_v41, %v1271_v43 }
 0x3e6   :  { %3031 = vmatprep.subr.bf16.mxu1 %v3886_v55  ;;  %v3839_v55 = vcombine.low %v1395_v44, %v1399_v20  ;;  %v1231_v25 = vld [vmem:[#allocation20 + $0x38] sm:$0xff] }
 0x3e7   :  { %v1355_v26 = vld [vmem:[#allocation20 + $0x418] sm:$0xff]  ;;  %v3671_v37 = vcombine.low %v1227_v24, %v1231_v25 }
 0x3e8   :  { %2991 = vmatpush2.bf16.msra.mxu0 %v3757_v1  ;;  %v1383_v1 = vld [vmem:[#allocation20 + $0x4f8] sm:$0xff] }
 0x3e9   :  { %3032 = vmatpush2.bf16.msra.mxu1 %v3885_v3  ;;  %2992 = vmatprep.subr.bf16.mxu0 %v3750_v5  ;;  %v3831_v3 = vcombine.low %v1387_v49, %v1391_v50  ;;  %v3696_v5 = vcombine.high %v1251_v56, %v1255_v57  ;;  %v1359_v27 = vld [vmem:[#allocation20 + $0x438] sm:$0xff] }
 0x3ea   :  { %3033 = vmatprep.subr.bf16.mxu1 %v3878_v6  ;;  %v3824_v6 = vcombine.high %v1379_v61, %v1383_v1  ;;  %v1347_v30 = vld [vmem:[#allocation20 + $0x3d8] sm:$0xff] }
 0x3eb   :  { %v1351_v33 = vld [vmem:[#allocation20 + $0x3f8] sm:$0xff] }
 0x3ec   :  { %2993 = vmatpush2.bf16.msra.mxu0 %v3749_v58  ;;  %v3695_v58 = vcombine.low %v1251_v56, %v1255_v57  ;;  %v1479_v36 = vld [vmem:[#allocation20 + $0x7f8] sm:$0xff] }
 0x3ed   :  { %3034 = vmatpush2.bf16.msra.mxu1 %v3877_v59  ;;  %2994 = vmatprep.subr.bf16.mxu0 %v3742_v60  ;;  %v3823_v59 = vcombine.low %v1379_v61, %v1383_v1  ;;  %v3688_v60 = vcombine.high %v1243_v7, %v1247_v8  ;;  %v1339_v43 = vld [vmem:[#allocation20 + $0x398] sm:$0xff] }
 0x3ee   :  { %3035 = vmatprep.subr.bf16.mxu1 %v3870_v62  ;;  %v3816_v62 = vcombine.high %v1371_v9, %v1375_v10  ;;  %v1467_v44 = vld [vmem:[#allocation20 + $0x798] sm:$0xff] }
 0x3ef   :  { %v1471_v20 = vld [vmem:[#allocation20 + $0x7b8] sm:$0xff] }
 0x3f0   :  { %2995 = vmatpush2.bf16.msra.mxu0 %v3741_v16  ;;  %v3687_v16 = vcombine.low %v1243_v7, %v1247_v8  ;;  %v1323_v56 = vld [vmem:[#allocation20 + $0x318] sm:$0xff] }
 0x3f1   :  { %3036 = vmatpush2.bf16.msra.mxu1 %v3869_v18  ;;  %2996 = vmatprep.subr.bf16.mxu0 %v3734_v22  ;;  %v3815_v18 = vcombine.low %v1371_v9, %v1375_v10  ;;  %v3680_v22 = vcombine.high %v1235_v63, %v1239_v0  ;;  %v1327_v57 = vld [vmem:[#allocation20 + $0x338] sm:$0xff] }
 0x3f2   :  { %3037 = vmatprep.subr.bf16.mxu1 %v3862_v23  ;;  %v3808_v23 = vcombine.high %v1363_v13, %v1367_v14  ;;  %v1451_v61 = vld [vmem:[#allocation20 + $0x718] sm:$0xff] }
 0x3f3   :  { %v1455_v1 = vld [vmem:[#allocation20 + $0x738] sm:$0xff] }
 0x3f4   :  { %2997 = vmatpush2.bf16.msra.mxu0 %v3733_v28  ;;  %v3679_v28 = vcombine.low %v1235_v63, %v1239_v0  ;;  %v1315_v7 = vld [vmem:[#allocation20 + $0x2d8] sm:$0xff] }
 0x3f5   :  { %3038 = vmatpush2.bf16.msra.mxu1 %v3861_v29  ;;  %3048 = vmatprep.subr.bf16.mxu0 %v3728_v17  ;;  %v3807_v29 = vcombine.low %v1363_v13, %v1367_v14  ;;  %v3672_v17 = vcombine.high %v1227_v24, %v1231_v25  ;;  %v1319_v8 = vld [vmem:[#allocation20 + $0x2f8] sm:$0xff] }
 0x3f6   :  { %3089 = vmatprep.subr.bf16.mxu1 %v3856_v15  ;;  %v3800_v15 = vcombine.high %v1355_v26, %v1359_v27  ;;  %v1443_v9 = vld [vmem:[#allocation20 + $0x6d8] sm:$0xff] }
 0x3f7   :  { %2999 = vmatmul.mubr.bf16.vlgmr.msra.gmra.mxu0 %v4632_v42  ;;  %v1447_v10 = vld [vmem:[#allocation20 + $0x6f8] sm:$0xff] }
 0x3f8   :  { %3040 = vmatmul.mubr.bf16.vlgmr.msra.gmra.mxu1 %v4634_v53  ;;  %3049 = vmatpush1.bf16.msra.mxu0 %v3727_v35  ;;  %v1475_v35 = vld [vmem:[#allocation20 + $0x7d8] sm:$0xff] }
 0x3f9   :  { %3080 = vmatprep.mubr.bf16.mxu0 %v4628_v51  ;;  %3090 = vmatpush1.bf16.msra.mxu1 %v3855_v39  ;;  %v3832_v51 = vcombine.high %v1387_v49, %v1391_v50  ;;  %v3799_v39 = vcombine.low %v1355_v26, %v1359_v27  ;;  %v3920_v41 = vcombine.high %v1475_v35, %v1479_v36  ;;  %v1459_v49 = vld [vmem:[#allocation20 + $0x758] sm:$0xff] }
 0x3fa   :  { %3121 = vmatprep.mubr.bf16.mxu1 %v4630_v52  ;;  %3050 = vmatprep.subr.bf16.mxu0 %v3720_v40  ;;  %v3703_v52 = vcombine.low %v1259_v47, %v1263_v48  ;;  %v3792_v40 = vcombine.high %v1347_v30, %v1351_v33  ;;  %v1331_v47 = vld [vmem:[#allocation20 + $0x358] sm:$0xff] }
 0x3fb   :  { %3091 = vmatprep.subr.bf16.mxu1 %v3848_v21  ;;  %v1343_v21 = vld [vmem:[#allocation20 + $0x3b8] sm:$0xff] }
 0x3fc   :  { %3051 = vmatpush1.bf16.msra.mxu0 %v3719_v45  ;;  %v3791_v45 = vcombine.low %v1347_v30, %v1351_v33  ;;  %v1335_v48 = vld [vmem:[#allocation20 + $0x378] sm:$0xff] }
 0x3fd   :  { %3092 = vmatpush1.bf16.msra.mxu1 %v3847_v11  ;;  %3052 = vmatprep.subr.bf16.mxu0 %v3712_v46  ;;  %v3919_v11 = vcombine.low %v1475_v35, %v1479_v36  ;;  %v3784_v46 = vcombine.high %v1339_v43, %v1343_v21  ;;  %v1463_v50 = vld [vmem:[#allocation20 + $0x778] sm:$0xff] }
 0x3fe   :  { %3093 = vmatprep.subr.bf16.mxu1 %v3840_v12  ;;  %v3912_v12 = vcombine.high %v1467_v44, %v1471_v20  ;;  %v1307_v63 = vld [vmem:[#allocation20 + $0x298] sm:$0xff] }
 0x3ff   :  { %v1311_v0 = vld [vmem:[#allocation20 + $0x2b8] sm:$0xff] }
 0x400   :  { %3053 = vmatpush1.bf16.msra.mxu0 %v3711_v54  ;;  %v3783_v54 = vcombine.low %v1339_v43, %v1343_v21  ;;  %v1435_v13 = vld [vmem:[#allocation20 + $0x698] sm:$0xff] }
 0x401   :  { %3094 = vmatpush1.bf16.msra.mxu1 %v3839_v55  ;;  %3054 = vmatprep.subr.bf16.mxu0 %v3704_v38  ;;  %v3911_v55 = vcombine.low %v1467_v44, %v1471_v20  ;;  %v3776_v38 = vcombine.high %v1331_v47, %v1335_v48  ;;  %v1439_v14 = vld [vmem:[#allocation20 + $0x6b8] sm:$0xff]  ;;  %v4659_v44 = vld [vmem:[%s4835_s12] sm:$0xff] }
 0x402   :  { %3095 = vmatprep.subr.bf16.mxu1 %v3832_v51  ;;  %v3904_v51 = vcombine.high %v1459_v49, %v1463_v50  ;;  %v1299_v24 = vld [vmem:[#allocation20 + $0x258] sm:$0xff]  ;;  %v1485_v20 = vrot.slane %v4659_v44, %v4535_v32 }
 0x403   :  { %v1303_v25 = vld [vmem:[#allocation20 + $0x278] sm:$0xff] }
 0x404   :  { %3055 = vmatpush1.bf16.msra.mxu0 %v3703_v52  ;;  %v3775_v52 = vcombine.low %v1331_v47, %v1335_v48  ;;  %v1427_v26 = vld [vmem:[#allocation20 + $0x658] sm:$0xff] }
 0x405   :  { %3096 = vmatpush1.bf16.msra.mxu1 %v3831_v3  ;;  %3056 = vmatprep.subr.bf16.mxu0 %v3696_v5  ;;  %v3903_v3 = vcombine.low %v1459_v49, %v1463_v50  ;;  %v3768_v5 = vcombine.high %v1323_v56, %v1327_v57  ;;  %v1431_v27 = vld [vmem:[#allocation20 + $0x678] sm:$0xff] }
 0x406   :  { %3097 = vmatprep.subr.bf16.mxu1 %v3824_v6  ;;  %v3896_v6 = vcombine.high %v1451_v61, %v1455_v1  ;;  %v1291_v30 = vld [vmem:[#allocation20 + $0x218] sm:$0xff] }
 0x407   :  { %v1295_v33 = vld [vmem:[#allocation20 + $0x238] sm:$0xff] }
 0x408   :  { %3057 = vmatpush1.bf16.msra.mxu0 %v3695_v58  ;;  %v3767_v58 = vcombine.low %v1323_v56, %v1327_v57  ;;  %v1419_v35 = vld [vmem:[#allocation20 + $0x618] sm:$0xff]  ;;  %v3735_v43 = vcombine.low %v1291_v30, %v1295_v33 }
 0x409   :  { %3098 = vmatpush1.bf16.msra.mxu1 %v3823_v59  ;;  %3058 = vmatprep.subr.bf16.mxu0 %v3688_v60  ;;  %v3895_v59 = vcombine.low %v1451_v61, %v1455_v1  ;;  %v3760_v60 = vcombine.high %v1315_v7, %v1319_v8  ;;  %v1423_v36 = vld [vmem:[#allocation20 + $0x638] sm:$0xff] }
 0x40a   :  { %3099 = vmatprep.subr.bf16.mxu1 %v3816_v62  ;;  %v3888_v62 = vcombine.high %v1443_v9, %v1447_v10  ;;  %v3863_v21 = vcombine.low %v1419_v35, %v1423_v36 }
 0x40c   :  { %3059 = vmatpush1.bf16.msra.mxu0 %v3687_v16  ;;  %v3759_v16 = vcombine.low %v1315_v7, %v1319_v8 }
 0x40d   :  { %3100 = vmatpush1.bf16.msra.mxu1 %v3815_v18  ;;  %3060 = vmatprep.subr.bf16.mxu0 %v3680_v22  ;;  %v3887_v18 = vcombine.low %v1443_v9, %v1447_v10  ;;  %v3752_v22 = vcombine.high %v1307_v63, %v1311_v0 }
 0x40e   :  { %3101 = vmatprep.subr.bf16.mxu1 %v3808_v23  ;;  %v3880_v23 = vcombine.high %v1435_v13, %v1439_v14 }
 0x410   :  { %3061 = vmatpush1.bf16.msra.mxu0 %v3679_v28  ;;  %v3751_v28 = vcombine.low %v1307_v63, %v1311_v0 }
 0x411   :  { %3102 = vmatpush1.bf16.msra.mxu1 %v3807_v29  ;;  %3062 = vmatprep.subr.bf16.mxu0 %v3672_v17  ;;  %v3879_v29 = vcombine.low %v1435_v13, %v1439_v14  ;;  %v3744_v17 = vcombine.high %v1299_v24, %v1303_v25 }
 0x412   :  { %3103 = vmatprep.subr.bf16.mxu1 %v3800_v15  ;;  %v3872_v15 = vcombine.high %v1427_v26, %v1431_v27 }
 0x414   :  { %3063 = vmatpush1.bf16.msra.mxu0 %v3671_v37  ;;  %v3743_v37 = vcombine.low %v1299_v24, %v1303_v25 }
 0x415   :  { %3104 = vmatpush1.bf16.msra.mxu1 %v3799_v39  ;;  %3064 = vmatprep.subr.bf16.mxu0 %v3792_v40  ;;  %v3871_v39 = vcombine.low %v1427_v26, %v1431_v27  ;;  %v3736_v40 = vcombine.high %v1291_v30, %v1295_v33 }
 0x416   :  { %3105 = vmatprep.subr.bf16.mxu1 %v3920_v41  ;;  %v3864_v41 = vcombine.high %v1419_v35, %v1423_v36 }
 0x418   :  { %3065 = vmatpush2.bf16.msra.mxu0 %v3791_v45  ;;  %v1489_v45 = vrot.slane %v4659_v44, %v4538_v34 }
 0x419   :  { %3106 = vmatpush2.bf16.msra.mxu1 %v3919_v11  ;;  %3066 = vmatprep.subr.bf16.mxu0 %v3784_v46 }
 0x41a   :  { %3107 = vmatprep.subr.bf16.mxu1 %v3912_v12 }
 0x41c   :  { %3067 = vmatpush2.bf16.msra.mxu0 %v3783_v54 }
 0x41d   :  { %3108 = vmatpush2.bf16.msra.mxu1 %v3911_v55  ;;  %3068 = vmatprep.subr.bf16.mxu0 %v3776_v38 }
 0x41e   :  { %3109 = vmatprep.subr.bf16.mxu1 %v3904_v51 }
 0x420   :  { %3069 = vmatpush2.bf16.msra.mxu0 %v3775_v52 }
 0x421   :  { %3110 = vmatpush2.bf16.msra.mxu1 %v3903_v3  ;;  %3070 = vmatprep.subr.bf16.mxu0 %v3768_v5 }
 0x422   :  { %3111 = vmatprep.subr.bf16.mxu1 %v3896_v6 }
 0x424   :  { %3071 = vmatpush2.bf16.msra.mxu0 %v3767_v58 }
 0x425   :  { %3112 = vmatpush2.bf16.msra.mxu1 %v3895_v59  ;;  %3072 = vmatprep.subr.bf16.mxu0 %v3760_v60 }
 0x426   :  { %3113 = vmatprep.subr.bf16.mxu1 %v3888_v62 }
 0x428   :  { %3073 = vmatpush2.bf16.msra.mxu0 %v3759_v16 }
 0x429   :  { %3114 = vmatpush2.bf16.msra.mxu1 %v3887_v18  ;;  %3074 = vmatprep.subr.bf16.mxu0 %v3752_v22 }
 0x42a   :  { %3115 = vmatprep.subr.bf16.mxu1 %v3880_v23 }
 0x42c   :  { %3075 = vmatpush2.bf16.msra.mxu0 %v3751_v28 }
 0x42d   :  { %3116 = vmatpush2.bf16.msra.mxu1 %v3879_v29  ;;  %3076 = vmatprep.subr.bf16.mxu0 %v3744_v17 }
 0x42e   :  { %3117 = vmatprep.subr.bf16.mxu1 %v3872_v15 }
 0x430   :  { %3077 = vmatpush2.bf16.msra.mxu0 %v3743_v37 }
 0x431   :  { %3118 = vmatpush2.bf16.msra.mxu1 %v3871_v39  ;;  %3078 = vmatprep.subr.bf16.mxu0 %v3736_v40  ;;  %v1493_v40 = vrot.slane %v4659_v44, %v4577_v2 }
 0x432   :  { %3119 = vmatprep.subr.bf16.mxu1 %v3864_v41  ;;  %v1497_v41 = vrot.slane %v4659_v44, %v4580_v4 }
 0x434   :  { %3079 = vmatpush2.bf16.msra.mxu0 %v3735_v43 }
 0x435   :  { %3120 = vmatpush2.bf16.msra.mxu1 %v3863_v21 }
 0x437   :  { %3081 = vmatmul.mubr.bf16.vlgmr.msra.gmra.mxu0 %v4632_v42  ;;  %v2836_v11 = vpop.f32.mrf.mxu0  ;;  %v2877_v46 = vpop.f32.mrf.mxu1 }
 0x438   :  { %3122 = vmatmul.mubr.bf16.vlgmr.msra.gmra.mxu1 %v4634_v53  ;;  %v2837_v12 = vadd.f32 %v2836_v11, %v1485_v20 }
 0x439   :  { %v2838_v47 = vpop.f32.mrf.mxu0  ;;  %v2879_v48 = vpop.f32.mrf.mxu1 }
 0x43a   :  { %v4667_v49 = vadd.f32 %v2877_v46, %v2837_v12  ;;  %v2839_v50 = vadd.f32 %v2838_v47, %v1489_v45 }
 0x43b   :  { %v2840_v54 = vpop.f32.mrf.mxu0  ;;  %v2881_v55 = vpop.f32.mrf.mxu1 }
 0x43c   :  { %v3132_v38 = vrot.slane %v4667_v49, 4  ;;  %v3188_v51 = vmul.f32 %v4667_v49, %v4667_v49  ;;  %v4672_v56 = vadd.f32 %v2879_v48, %v2839_v50 }
 0x43d   :  { %v2841_v42 = vpop.f32.mrf.mxu0  ;;  %v2882_v57 = vpop.f32.mrf.mxu1 }
 0x43e   :  { %v3133_v61 = vadd.f32 %v3132_v38, %v4667_v49  ;;  %v3196_v53 = vrot.slane %v3188_v51, 4  ;;  %v3138_v1 = vrot.slane %v4672_v56, 4  ;;  %v3189_v52 = vmul.f32 %v4672_v56, %v4672_v56 }
 0x440   :  { %v3134_v3 = vrot.slane %v3133_v61, 2  ;;  %v3197_v5 = vadd.f32 %v3196_v53, %v3188_v51  ;;  %v3139_v6 = vadd.f32 %v3138_v1, %v4672_v56  ;;  %v3202_v7 = vrot.slane %v3189_v52, 4 }
 0x442   :  { %v3135_v8 = vadd.f32 %v3134_v3, %v3133_v61  ;;  %v3198_v9 = vrot.slane %v3197_v5, 2  ;;  %v3140_v10 = vrot.slane %v3139_v6, 2  ;;  %v3203_v58 = vadd.f32 %v3202_v7, %v3189_v52 }
 0x444   :  { %v3136_v59 = vrot.slane %v3135_v8, 1  ;;  %v3199_v60 = vadd.f32 %v3198_v9, %v3197_v5  ;;  %v3141_v62 = vadd.f32 %v3140_v10, %v3139_v6  ;;  %v3204_v63 = vrot.slane %v3203_v58, 2 }
 0x446   :  { %v3137_v0 = vadd.f32 %v3136_v59, %v3135_v8  ;;  %v3200_v13 = vrot.slane %v3199_v60, 1  ;;  %v3142_v14 = vrot.slane %v3141_v62, 1  ;;  %v3205_v16 = vadd.f32 %v3204_v63, %v3203_v58 }
 0x448   :  { %v4679_v18 = vmul.f32 0.125, %v3137_v0  ;;  %v3201_v22 = vadd.f32 %v3200_v13, %v3199_v60  ;;  %v3143_v23 = vadd.f32 %v3142_v14, %v3141_v62  ;;  %v3206_v24 = vrot.slane %v3205_v16, 1 }
 0x44a   :  { %v3244_v25 = vmul.f32 0.125, %v3201_v22  ;;  %v3252_v26 = vmul.f32 %v4679_v18, %v4679_v18  ;;  %v4683_v27 = vmul.f32 0.125, %v3143_v23  ;;  %v3207_v28 = vadd.f32 %v3206_v24, %v3205_v16 }
 0x44c   :  { %v3260_v29 = vsub.f32 %v3244_v25, %v3252_v26  ;;  %v3245_v17 = vmul.f32 0.125, %v3207_v28  ;;  %v3253_v15 = vmul.f32 %v4683_v27, %v4683_v27 }
 0x44e   :  { %v3268_v30 = vadd.f32 0.8, %v3260_v29  ;;  %v3261_v33 = vsub.f32 %v3245_v17, %v3253_v15 }
 0x450   :  { %v3269_v35 = vadd.f32 0.8, %v3261_v33  ;;  %4099 = vrsqrt.f32 %v3268_v30 }
 0x452   :  { %4101 = vrsqrt.f32 %v3269_v35 }
 0x45d   :  { %v4100_v36 = vpop.eup %4099 }
 0x45f   :  { %v4102_v37 = vpop.eup %4101 }
 0x460   :  { %v3292_v39 = vcombine.low %v4100_v36, %v4102_v37 }
 0x477   :  { %v2918_v43 = vpop.f32.mrf.mxu0  ;;  %v2959_v21 = vpop.f32.mrf.mxu1 }
 0x478   :  { %v2919_v20 = vadd.f32 %v2918_v43, %v1493_v40 }
 0x479   :  { %v2920_v45 = vpop.f32.mrf.mxu0  ;;  %v2961_v11 = vpop.f32.mrf.mxu1 }
 0x47a   :  { %v4691_v46 = vadd.f32 %v2959_v21, %v2919_v20  ;;  %v2921_v12 = vadd.f32 %v2920_v45, %v1497_v41  ;;  %v4712_v41 = vrot.slane %v3292_v39, %v4549_v19  ;;  %v4720_v20 = vsub.s32 4, %v4532_v31 }
 0x47b   :  { %v2922_v47 = vpop.f32.mrf.mxu0  ;;  %v2963_v48 = vpop.f32.mrf.mxu1  ;;  %v4723_v45 = vsub.s32 5, %v4532_v31 }
 0x47c   :  { %v3144_v50 = vrot.slane %v4691_v46, 4  ;;  %v3190_v54 = vmul.f32 %v4691_v46, %v4691_v46  ;;  %v4696_v55 = vadd.f32 %v2961_v11, %v2921_v12  ;;  %v1501_v11 = vrot.slane %v4659_v44, %v4720_v20 }
 0x47d   :  { %v2923_v38 = vpop.f32.mrf.mxu0  ;;  %v2964_v51 = vpop.f32.mrf.mxu1  ;;  %v1505_v12 = vrot.slane %v4659_v44, %v4723_v45 }
 0x47e   :  { %v3145_v42 = vadd.f32 %v3144_v50, %v4691_v46  ;;  %v3208_v57 = vrot.slane %v3190_v54, 4  ;;  %v3150_v61 = vrot.slane %v4696_v55, 4  ;;  %v3191_v53 = vmul.f32 %v4696_v55, %v4696_v55 }
 0x480   :  { %v3146_v1 = vrot.slane %v3145_v42, 2  ;;  %v3209_v52 = vadd.f32 %v3208_v57, %v3190_v54  ;;  %v3151_v3 = vadd.f32 %v3150_v61, %v4696_v55  ;;  %v3214_v5 = vrot.slane %v3191_v53, 4 }
 0x482   :  { %v3147_v6 = vadd.f32 %v3146_v1, %v3145_v42  ;;  %v3210_v7 = vrot.slane %v3209_v52, 2  ;;  %v3152_v8 = vrot.slane %v3151_v3, 2  ;;  %v3215_v9 = vadd.f32 %v3214_v5, %v3191_v53 }
 0x484   :  { %v3148_v10 = vrot.slane %v3147_v6, 1  ;;  %v3211_v58 = vadd.f32 %v3210_v7, %v3209_v52  ;;  %v3153_v59 = vadd.f32 %v3152_v8, %v3151_v3  ;;  %v3216_v60 = vrot.slane %v3215_v9, 2 }
 0x486   :  { %v3149_v62 = vadd.f32 %v3148_v10, %v3147_v6  ;;  %v3212_v63 = vrot.slane %v3211_v58, 1  ;;  %v3154_v0 = vrot.slane %v3153_v59, 1  ;;  %v3217_v13 = vadd.f32 %v3216_v60, %v3215_v9 }
 0x488   :  { %v4703_v14 = vmul.f32 0.125, %v3149_v62  ;;  %v3213_v16 = vadd.f32 %v3212_v63, %v3211_v58  ;;  %v3155_v22 = vadd.f32 %v3154_v0, %v3153_v59  ;;  %v3218_v23 = vrot.slane %v3217_v13, 1 }
 0x48a   :  { %v3246_v24 = vmul.f32 0.125, %v3213_v16  ;;  %v3254_v25 = vmul.f32 %v4703_v14, %v4703_v14  ;;  %v4707_v26 = vmul.f32 0.125, %v3155_v22  ;;  %v3219_v28 = vadd.f32 %v3218_v23, %v3217_v13 }
 0x48c   :  { %v3262_v29 = vsub.f32 %v3246_v24, %v3254_v25  ;;  %v3247_v17 = vmul.f32 0.125, %v3219_v28  ;;  %v3255_v15 = vmul.f32 %v4707_v26, %v4707_v26 }
 0x48e   :  { %v3270_v30 = vadd.f32 0.8, %v3262_v29  ;;  %v3263_v33 = vsub.f32 %v3247_v17, %v3255_v15 }
 0x490   :  { %v3271_v35 = vadd.f32 0.8, %v3263_v33  ;;  %4103 = vrsqrt.f32 %v3270_v30 }
 0x492   :  { %4105 = vrsqrt.f32 %v3271_v35 }
 0x49d   :  { %v4104_v36 = vpop.eup %4103 }
 0x49f   :  { %v4106_v37 = vpop.eup %4105 }
 0x4a0   :  { %v3293_v40 = vcombine.low %v4104_v36, %v4106_v37 }
 0x4a2   :  { %v4715_v43 = vrot.slane %v3293_v40, %v4549_v19 }
 0x4a4   :  { %v3324_v21 = vcombine.low %v4712_v41, %v4715_v43 }
 0x4b7   :  { %v3000_v39 = vpop.f32.mrf.mxu0 }
 0x4b8   :  { %v3001_v47 = vadd.f32 %v3000_v39, %v1501_v11  ;;  %v3041_v48 = vpop.f32.mrf.mxu1 }
 0x4b9   :  { %v3002_v50 = vpop.f32.mrf.mxu0 }
 0x4ba   :  { %v4729_v54 = vadd.f32 %v3041_v48, %v3001_v47  ;;  %v3003_v38 = vadd.f32 %v3002_v50, %v1505_v12  ;;  %v3043_v51 = vpop.f32.mrf.mxu1 }
 0x4bb   :  { %v3004_v42 = vpop.f32.mrf.mxu0 }
 0x4bc   :  { %v3156_v57 = vrot.slane %v4729_v54, 4  ;;  %v3192_v61 = vmul.f32 %v4729_v54, %v4729_v54  ;;  %v4734_v53 = vadd.f32 %v3043_v51, %v3003_v38  ;;  %v3045_v1 = vpop.f32.mrf.mxu1 }
 0x4bd   :  { %v3005_v52 = vpop.f32.mrf.mxu0 }
 0x4be   :  { %v3157_v3 = vadd.f32 %v3156_v57, %v4729_v54  ;;  %v3220_v5 = vrot.slane %v3192_v61, 4  ;;  %v3162_v6 = vrot.slane %v4734_v53, 4  ;;  %v3193_v7 = vmul.f32 %v4734_v53, %v4734_v53  ;;  %v3046_v8 = vpop.f32.mrf.mxu1 }
 0x4bf   :  { %v4750_v57 = vsub.s32 6, %v4532_v31 }
 0x4c0   :  { %v3158_v9 = vrot.slane %v3157_v3, 2  ;;  %v3221_v10 = vadd.f32 %v3220_v5, %v3192_v61  ;;  %v3163_v58 = vadd.f32 %v3162_v6, %v4734_v53  ;;  %v3226_v59 = vrot.slane %v3193_v7, 4 }
 0x4c1   :  { %v4753_v61 = vsub.s32 7, %v4532_v31  ;;  %v1509_v1 = vrot.slane %v4659_v44, %v4750_v57 }
 0x4c2   :  { %v3159_v60 = vadd.f32 %v3158_v9, %v3157_v3  ;;  %v3222_v62 = vrot.slane %v3221_v10, 2  ;;  %v3164_v63 = vrot.slane %v3163_v58, 2  ;;  %v3227_v0 = vadd.f32 %v3226_v59, %v3193_v7 }
 0x4c3   :  { %v1513_v52 = vrot.slane %v4659_v44, %v4753_v61 }
 0x4c4   :  { %v3160_v13 = vrot.slane %v3159_v60, 1  ;;  %v3223_v16 = vadd.f32 %v3222_v62, %v3221_v10  ;;  %v3165_v22 = vadd.f32 %v3164_v63, %v3163_v58  ;;  %v3228_v23 = vrot.slane %v3227_v0, 2 }
 0x4c6   :  { %v3161_v24 = vadd.f32 %v3160_v13, %v3159_v60  ;;  %v3224_v25 = vrot.slane %v3223_v16, 1  ;;  %v3166_v28 = vrot.slane %v3165_v22, 1  ;;  %v3229_v29 = vadd.f32 %v3228_v23, %v3227_v0 }
 0x4c8   :  { %v4741_v17 = vmul.f32 0.125, %v3161_v24  ;;  %v3225_v15 = vadd.f32 %v3224_v25, %v3223_v16  ;;  %v3167_v30 = vadd.f32 %v3166_v28, %v3165_v22  ;;  %v3230_v33 = vrot.slane %v3229_v29, 1 }
 0x4ca   :  { %v3248_v35 = vmul.f32 0.125, %v3225_v15  ;;  %v3256_v36 = vmul.f32 %v4741_v17, %v4741_v17  ;;  %v4745_v37 = vmul.f32 0.125, %v3167_v30  ;;  %v3231_v40 = vadd.f32 %v3230_v33, %v3229_v29 }
 0x4cc   :  { %v3264_v11 = vsub.f32 %v3248_v35, %v3256_v36  ;;  %v3249_v12 = vmul.f32 0.125, %v3231_v40  ;;  %v3257_v39 = vmul.f32 %v4745_v37, %v4745_v37 }
 0x4ce   :  { %v3272_v47 = vadd.f32 0.8, %v3264_v11  ;;  %v3265_v48 = vsub.f32 %v3249_v12, %v3257_v39 }
 0x4d0   :  { %v3273_v50 = vadd.f32 0.8, %v3265_v48  ;;  %4107 = vrsqrt.f32 %v3272_v47 }
 0x4d2   :  { %4109 = vrsqrt.f32 %v3273_v50 }
 0x4dd   :  { %v4108_v38 = vpop.eup %4107 }
 0x4df   :  { %v4110_v51 = vpop.eup %4109 }
 0x4e0   :  { %v3294_v42 = vcombine.low %v4108_v38, %v4110_v51 }
 0x4f7   :  { %v3082_v3 = vpop.f32.mrf.mxu0 }
 0x4f8   :  { %v3083_v5 = vadd.f32 %v3082_v3, %v1509_v1  ;;  %v3123_v6 = vpop.f32.mrf.mxu1 }
 0x4f9   :  { %v3084_v7 = vpop.f32.mrf.mxu0 }
 0x4fa   :  { %v4759_v8 = vadd.f32 %v3123_v6, %v3083_v5  ;;  %v3085_v9 = vadd.f32 %v3084_v7, %v1513_v52  ;;  %v3125_v10 = vpop.f32.mrf.mxu1 }
 0x4fb   :  { %v3086_v58 = vpop.f32.mrf.mxu0 }
 0x4fc   :  { %v3168_v59 = vrot.slane %v4759_v8, 4  ;;  %v3194_v31 = vmul.f32 %v4759_v8, %v4759_v8  ;;  %v4764_v60 = vadd.f32 %v3125_v10, %v3085_v9  ;;  %v3127_v62 = vpop.f32.mrf.mxu1 }
 0x4fd   :  { %v3087_v63 = vpop.f32.mrf.mxu0 }
 0x4fe   :  { %v3169_v44 = vadd.f32 %v3168_v59, %v4759_v8  ;;  %v3232_v0 = vrot.slane %v3194_v31, 4  ;;  %v3174_v13 = vrot.slane %v4764_v60, 4  ;;  %v3195_v16 = vmul.f32 %v4764_v60, %v4764_v60  ;;  %v3128_v22 = vpop.f32.mrf.mxu1 }
 0x4ff   :  { %v3332_v22 = vrot.slane %v3324_v21, %v4549_v19 }
 0x500   :  { %v3170_v23 = vrot.slane %v3169_v44, 2  ;;  %v3233_v24 = vadd.f32 %v3232_v0, %v3194_v31  ;;  %v3175_v25 = vadd.f32 %v3174_v13, %v4764_v60  ;;  %v3238_v28 = vrot.slane %v3195_v16, 4 }
 0x501   :  { %v3316_v0 = vrot.slane %v3294_v42, %v4549_v19 }
 0x502   :  { %v3171_v29 = vadd.f32 %v3170_v23, %v3169_v44  ;;  %v3234_v15 = vrot.slane %v3233_v24, 2  ;;  %v3176_v30 = vrot.slane %v3175_v25, 2  ;;  %v3239_v33 = vadd.f32 %v3238_v28, %v3195_v16 }
 0x504   :  { %v3172_v35 = vrot.slane %v3171_v29, 1  ;;  %v3235_v36 = vadd.f32 %v3234_v15, %v3233_v24  ;;  %v3177_v40 = vadd.f32 %v3176_v30, %v3175_v25  ;;  %v3240_v11 = vrot.slane %v3239_v33, 2  ;;  %v3130_v24 = vld [vmem:[%s4836_s13] sm:$0xff] }
 0x506   :  { %v3173_v12 = vadd.f32 %v3172_v35, %v3171_v29  ;;  %v3236_v39 = vrot.slane %v3235_v36, 1  ;;  %v3178_v47 = vrot.slane %v3177_v40, 1  ;;  %v3241_v48 = vadd.f32 %v3240_v11, %v3239_v33 }
 0x508   :  { %v3186_v50 = vmul.f32 0.125, %v3173_v12  ;;  %v3237_v38 = vadd.f32 %v3236_v39, %v3235_v36  ;;  %v3179_v51 = vadd.f32 %v3178_v47, %v3177_v40  ;;  %v3242_v1 = vrot.slane %v3241_v48, 1 }
 0x50a   :  { %v3250_v52 = vmul.f32 0.125, %v3237_v38  ;;  %v3258_v3 = vmul.f32 %v3186_v50, %v3186_v50  ;;  %v3187_v5 = vmul.f32 0.125, %v3179_v51  ;;  %v3243_v6 = vadd.f32 %v3242_v1, %v3241_v48 }
 0x50c   :  { %v3266_v7 = vsub.f32 %v3250_v52, %v3258_v3  ;;  %v3251_v9 = vmul.f32 0.125, %v3243_v6  ;;  %v3259_v10 = vmul.f32 %v3187_v5, %v3187_v5 }
 0x50e   :  { %v3274_v58 = vadd.f32 0.8, %v3266_v7  ;;  %v3267_v59 = vsub.f32 %v3251_v9, %v3259_v10 }
 0x510   :  { %v3275_v31 = vadd.f32 0.8, %v3267_v59  ;;  %4111 = vrsqrt.f32 %v3274_v58 }
 0x512   :  { %4113 = vrsqrt.f32 %v3275_v31 }
 0x51d   :  { %v4112_v62 = vpop.eup %4111 }
 0x51f   :  { %v4114_v63 = vpop.eup %4113 }
 0x520   :  { %v3295_v44 = vcombine.low %v4112_v62, %v4114_v63 }
 0x522   :  { %v3323_v13 = vrot.slane %v3295_v44, %v4549_v19 }
 0x524   :  { %v3325_v16 = vcombine.low %v3316_v0, %v3323_v13 }
 0x526   :  { %v3339_v23 = vrot.slane %v3325_v16, %v4549_v19 }
 0x528   :  { %v3340_v25 = vcombine.low %v3332_v22, %v3339_v23 }
 0x52a   :  { %v3342_v28 = vmul.f32 %v3340_v25, %v3130_v24 }
 0x52c   :  { %v3347_v29 = vrot.slane %v3342_v28, %v4535_v32  ;;  %v3351_v42 = vrot.slane %v3342_v28, %v4538_v34  ;;  %v3355_v15 = vrot.slane %v3342_v28, %v4577_v2  ;;  %v3359_v30 = vrot.slane %v3342_v28, %v4580_v4 }
 0x52d   :  { %v3363_v33 = vrot.slane %v3342_v28, %v4720_v20  ;;  %v3367_v41 = vrot.slane %v3342_v28, %v4723_v45  ;;  %v3371_v43 = vrot.slane %v3342_v28, %v4750_v57  ;;  %v3375_v21 = vrot.slane %v3342_v28, %v4753_v61 }
 0x52e   :  { %v3384_v35 = vmul.f32 %v3347_v29, %v4679_v18  ;;  %v3385_v36 = vmul.f32 %v3351_v42, %v4683_v27  ;;  %v3386_v40 = vmul.f32 %v3355_v15, %v4703_v14  ;;  %v3387_v11 = vmul.f32 %v3359_v30, %v4707_v26 }
 0x52f   :  { %v3388_v12 = vmul.f32 %v3363_v33, %v4741_v17  ;;  %v3389_v39 = vmul.f32 %v3367_v41, %v4745_v37  ;;  %v3390_v47 = vmul.f32 %v3371_v43, %v3186_v50  ;;  %v3391_v48 = vmul.f32 %v3375_v21, %v3187_v5 }
 0x530   :  { %v3400_v38 = vcombine.low %v3384_v35, %v3385_v36  ;;  %v3401_v51 = vcombine.low %v3386_v40, %v3387_v11  ;;  %v3458_v1 = vmul.f32 %v3375_v21, %v4764_v60  ;;  %v3451_v52 = vmul.f32 %v3347_v29, %v4667_v49 }
 0x531   :  { %v3402_v3 = vcombine.low %v3388_v12, %v3389_v39  ;;  %v3403_v18 = vcombine.low %v3390_v47, %v3391_v48  ;;  %v3452_v27 = vmul.f32 %v3351_v42, %v4672_v56  ;;  %v3453_v14 = vmul.f32 %v3355_v15, %v4691_v46 }
 0x532   :  { %v3410_v26 = vrot.slane %v3400_v38, %v4549_v19  ;;  %v3417_v17 = vrot.slane %v3401_v51, %v4549_v19  ;;  %v3454_v37 = vmul.f32 %v3359_v30, %v4696_v55  ;;  %v3455_v50 = vmul.f32 %v3363_v33, %v4729_v54  ;;  %v3131_v55 = vld [vmem:[%s4837_s14] sm:$0xff]  ;;  %s4415_s14 = smov [#allocation22]  }
 0x533   :  { %v3424_v5 = vrot.slane %v3402_v3, %v4549_v19  ;;  %v3431_v60 = vrot.slane %v3403_v18, %v4549_v19  ;;  %v3456_v49 = vmul.f32 %v3367_v41, %v4734_v53  ;;  %v3457_v6 = vmul.f32 %v3371_v43, %v4759_v8  ;;  %s3566_s26 = sshll.u32 %s4415_s14, 4  ;;  %s3567_s26 = int_to_ptr.vmem [resolvable:$true] %s3566_s26 }
 0x534   :  { %v3432_v7 = vcombine.low %v3410_v26, %v3417_v17  ;;  %s4355_s27 = scalar_lea.vmem %s3567_s26, 512  ;;  %p4360_p5 = scmp.lt.s32.totalorder %s3567_s26, %s3567_s26 }
 0x535   :  { %v3433_v56 = vcombine.low %v3424_v5, %v3431_v60  ;;  %p4356_p4 = scmp.ne.s32.totalorder %s3567_s26, %s4355_s27  ;;  %p4361_p6 = scmp.lt.s32.totalorder %s4355_s27, %s4355_s27 }
 0x536   :  { %v3440_v46 = vrot.slane %v3432_v7, %v4549_v19 }
 0x537   :  { %v3447_v9 = vrot.slane %v3433_v56, %v4549_v19  ;;  %p4362_p7 = por %p4361_p6, %p4360_p5 }
 0x539   :  { %v3448_v10 = vcombine.low %v3440_v46, %v3447_v9  ;;  %p4363_p8 = pnand %p4362_p7, %p4356_p4 }
 0x53b   :  { %v3450_v54 = vsub.f32 %v3131_v55, %v3448_v10 }
 0x53d   :  { %v3491_v58 = vrot.slane %v3450_v54, %v4753_v61  ;;  %v3463_v59 = vrot.slane %v3450_v54, %v4535_v32  ;;  %v3467_v53 = vrot.slane %v3450_v54, %v4538_v34  ;;  %v3471_v8 = vrot.slane %v3450_v54, %v4577_v2 }
 0x53e   :  { %v3475_v31 = vrot.slane %v3450_v54, %v4580_v4  ;;  %v3479_v62 = vrot.slane %v3450_v54, %v4720_v20  ;;  %v3483_v19 = vrot.slane %v3450_v54, %v4723_v45  ;;  %v3487_v63 = vrot.slane %v3450_v54, %v4750_v57 }
 0x53f   :  { %v3507_v44 = vadd.f32 %v3491_v58, %v3458_v1  ;;  %v3500_v0 = vadd.f32 %v3463_v59, %v3451_v52  ;;  %v3501_v13 = vadd.f32 %v3467_v53, %v3452_v27  ;;  %v3502_v16 = vadd.f32 %v3471_v8, %v3453_v14 }
 0x540   :  { %v3503_v22 = vadd.f32 %v3475_v31, %v3454_v37  ;;  %v3504_v61 = vadd.f32 %v3479_v62, %v3455_v50  ;;  %v3505_v23 = vadd.f32 %v3483_v19, %v3456_v49  ;;  %v3506_v32 = vadd.f32 %v3487_v63, %v3457_v6 }
 0x541   :  { %v3515_v24 = vmul.f32 0.2, %v3507_v44  ;;  %v3508_v34 = vmul.f32 0.2, %v3500_v0  ;;  %v3509_v25 = vmul.f32 0.2, %v3501_v13 }
 0x542   :  { %v3510_v2 = vmul.f32 0.2, %v3502_v16  ;;  %v3511_v28 = vmul.f32 0.2, %v3503_v22  ;;  %v3512_v4 = vmul.f32 0.2, %v3504_v61 }
 0x543   :  { %v3513_v29 = vmul.f32 0.2, %v3505_v23  ;;  %v3514_v20 = vmul.f32 0.2, %v3506_v32  ;;  %v3516_v42 = vmax.f32 %v3500_v0, %v3508_v34  ;;  %v3517_v45 = vmax.f32 %v3501_v13, %v3509_v25 }
 0x544   :  { %v3518_v15 = vmax.f32 %v3502_v16, %v3510_v2  ;;  %v3519_v57 = vmax.f32 %v3503_v22, %v3511_v28  ;;  %v3520_v30 = vmax.f32 %v3504_v61, %v3512_v4  ;;  %v3523_v33 = vmax.f32 %v3507_v44, %v3515_v24 }
 0x545   :  { %v3521_v41 = vmax.f32 %v3505_v23, %v3513_v29  ;;  %v3522_v43 = vmax.f32 %v3506_v32, %v3514_v20  ;;  %v3925_v21 = vpack.c.bf16 %v3517_v45, %v3516_v42 }
 0x546   :  { %v3926_v35 = vpack.c.bf16 %v3519_v57, %v3518_v15 }
 0x547   :  { %v3927_v36 = vpack.c.bf16 %v3521_v41, %v3520_v30  ;;  %v3928_v40 = vpack.c.bf16 %v3523_v33, %v3522_v43  ;;  %3556 = vst [vmem:[#allocation22] sm:$0xff] %v3925_v21 }
 0x548   :  { %3557 = vst [vmem:[#allocation22 + $0x8] sm:$0xff] %v3926_v35 }
 0x549   :  { %3558 = vst [vmem:[#allocation22 + $0x10] sm:$0xff] %v3927_v36  ;;  %3559 = vst [vmem:[#allocation22 + $0x18] sm:$0xff] %v3928_v40 }
 0x54a   :  { %4366 = shalt.err (!%p4363_p8)
}
 0x54b   :  { %3569 = dma.vmem_to_hbm [thread:$0]  %s3567_s26, 512, %s4838_s15, [#allocation4]  }
 0x54c   :  { %4389 = dma.done.wait [#allocation4], 512  }
 0x54d   :  { %4390 = vsyncadd [#allocation4], 4294966784 }
 0x54e   :  { %3573 = vsyncpa [#allocation3], 1 }
 0x54f   :  { %3574 = vsyncpa [#allocation6], 1 }
 0x550   :  { %3575 = vsyncpa [#allocation9], 1 }
 0x551   :  { %3576 = vsyncpa [#allocation12], 1 }
 0x552   :  { %3577 = vsyncpa [#allocation15], 1 }
 0x553   :  { %3578 = vsyncpa [#allocation18], 1 }
 0x554   :  { %3579 = vsyncpa [#allocation21], 1 }
 0x555   :  { %3580 = vsyncpa [#allocation4], 1 }

</bundles_post_ra>
